<compile_context>
chip_gen: v6e
topology: v6e:2x2x1
jax: 0.10.0
libtpu: 0.0.40
codegen_flags: <defaults>
</compile_context>

<pallas_src>
from enum import Enum
from functools import partial

import jax
import jax.numpy as jnp
from jax.experimental import pallas as pl
from jax.experimental.pallas import tpu as pltpu

NO_EDGE_OFFSET_T_CONORM = -1.0
NO_EDGE_OFFSET_T_NORM = 2.0


# Minimal stand-ins for the (not shown) PyTorch enums.
class EdgeType(Enum):
    identity = 0
    negation = 1
    no_edge = 2


class T_Norm(Enum):
    godel = 0     # .value(edge_values) == min over the in_features axis


class T_Conorm(Enum):
    godel = 0     # .value(edge_values) == max over the in_features axis


# ---------------------------------------------------------------------------
# Kernel
# ---------------------------------------------------------------------------
def diff_sample_kernel(x_ref, a_ref, b_ref, o_ref, acc_ref, *, is_tnorm,
                       num_k):
    """One (tile_n, tile_out) output tile, one in_features block.

    Grid = (num_samples/tile_n [parallel], out_features/tile_out [parallel],
            in_features/fin_block [arbitrary reduction]).

    x_ref:   (tile_n, fin_block)    compute dtype   samples on sublanes
    a_ref:   (fin_block, tile_out)  compute dtype   slope of selected edge
    b_ref:   (fin_block, tile_out)  compute dtype   offset of selected edge
    o_ref:   (tile_n, tile_out)     output dtype    resident across k
    acc_ref: (tile_n, tile_out)     compute dtype   VMEM accumulator
    """
    combine = jnp.minimum if is_tnorm else jnp.maximum
    fin_block = x_ref.shape[1]

    # Reduce this in_features block.  Static loop, but short (<= 128): the
    # remaining in_features live across the "arbitrary" grid axis, and the
    # live range inside the loop is bounded by the dependency through `acc`.
    # Per feature f, 2-D math only:
    #   x[:, f]  (tile_n, 1)   lane-broadcast column (already sublane oriented)
    #   A[f, :]  (1, tile_out) sublane-broadcast row
    # -> mul + add + min/max = 3 VALU ops per output element; the clamp is NOT
    # in the hot loop (hoisted to the finalize step below).
    def edge_val(f):
        return x_ref[:, f:f + 1] * a_ref[f:f + 1, :] + b_ref[f:f + 1, :]

    acc = edge_val(0)
    for f in range(1, fin_block):
        acc = combine(acc, edge_val(f))

    def finalize(total):
        # torch.max(selection * values, dim=-1) also sees the exact zeros of
        # the two non-selected one-hot entries; max(., 0) is monotone, so it
        # commutes with the min/max over in_features and is applied only once.
        o_ref[...] = jnp.maximum(total, 0.0).astype(o_ref.dtype)

    if num_k == 1:
        finalize(acc)
    else:
        k = pl.program_id(2)

        @pl.when(k == 0)
        def _():
            acc_ref[...] = acc

        @pl.when(jnp.logical_and(k > 0, k < num_k - 1))
        def _():
            acc_ref[...] = combine(acc_ref[...], acc)

        @pl.when(k == num_k - 1)
        def _():
            finalize(combine(acc_ref[...], acc))


# ---------------------------------------------------------------------------
# Wrapper helpers
# ---------------------------------------------------------------------------
def _default_compute_dtype():
    """bf16 on chips with bf16 VALUs (v6e / v7x), f32 otherwise (v5e, older)."""
    try:
        kind = jax.devices()[0].device_kind.lower()
    except Exception:
        return jnp.float32
    if "v6" in kind or "v7" in kind or "tpu7" in kind:
        return jnp.bfloat16
    return jnp.float32


def _pick_tile_n(n):
    # num_samples sits on the sublane axis of both x and the output, so any
    # multiple of 8 (or the full batch) is a legal tile.
    if n % 8 != 0 or n <= 128:
        return n
    for cand in (64, 128, 32, 16, 8):   # prefer 64: frees budget for tile_out
        if n % cand == 0:
            return cand
    return n


def _pick_tile_out(fout, tile_n, compute_dtype, max_plane_vregs=16):
    # Lane-dense out tile, as large as the vreg budget allows: the per-step
    # value / accumulator planes are (tile_n, tile_out) in compute dtype.
    assert fout % 128 == 0, "out_features must be a multiple of 128"
    sub = 16 if compute_dtype == jnp.bfloat16 else 8
    rows = -(-tile_n // sub)
    for cand in (2048, 1024, 512, 256, 128):
        if fout % cand == 0 and rows * (cand // 128) <= max_plane_vregs:
            return cand
    return 128


def _pick_fin_block(fin):
    # in_features is the lane axis of x, so grid blocks along it must be
    # multiples of 128 (or the whole axis).
    return 128 if (fin % 128 == 0 and fin > 128) else fin


def _gumbel_argmax(edges, key):
    # F.gumbel_softmax(hard=True): the forward value is the one-hot argmax of
    # (logits + gumbel noise); straight-through only changes gradients.
    u = jax.random.uniform(key, edges.shape, minval=1e-20, maxval=1.0)
    g = -jnp.log(-jnp.log(u))
    return jnp.argmax(edges + g, axis=-1)            # (Fout, Fin) int32


def _edge_affine(idx, edge_types, no_edge_offset, dtype):
    """Selected edge value as an affine function of x: v(x) = A*x + B."""
    a_tab, b_tab = [], []
    for e in edge_types:
        if e == EdgeType.identity:
            a_tab.append(1.0), b_tab.append(0.0)
        elif e == EdgeType.negation:
            a_tab.append(-1.0), b_tab.append(1.0)
        elif e == EdgeType.no_edge:
            a_tab.append(0.0), b_tab.append(no_edge_offset)
        else:
            raise NotImplementedError(f"unsupported edge type: {e}")
    a_tab = jnp.asarray(a_tab, dtype)
    b_tab = jnp.asarray(b_tab, dtype)
    return a_tab[idx], b_tab[idx]                    # each (Fout, Fin)


# ---------------------------------------------------------------------------
# Forward
# ---------------------------------------------------------------------------
def diff_sample_forward(x, edges, gumbel_key, operator, edge_types, *,
                        compute_dtype=None):
    """x: (num_samples, in_features); edges: (out_features, in_features, E)."""
    n, fin = x.shape
    fout, fin2, e = edges.shape
    assert fin2 == fin and e == len(edge_types)

    if compute_dtype is None:
        compute_dtype = _default_compute_dtype()

    is_tnorm = isinstance(operator, T_Norm)
    no_edge_offset = float(NO_EDGE_OFFSET_T_NORM if is_tnorm
                           else NO_EDGE_OFFSET_T_CONORM)

    # Selection decode in the wrapper (fused by XLA into the argmax consumer).
    idx = _gumbel_argmax(edges, gumbel_key)                      # (Fout, Fin)
    a, b = _edge_affine(idx, edge_types, no_edge_offset, compute_dtype)
    a_t = a.T                                                    # (Fin, Fout)
    b_t = b.T
    x_c = x.astype(compute_dtype)                                # (N, Fin)

    tile_n = _pick_tile_n(n)
    tile_out = _pick_tile_out(fout, tile_n, compute_dtype)
    fin_block = _pick_fin_block(fin)
    num_k = fin // fin_block
    grid = (n // tile_n, fout // tile_out, num_k)

    kern = partial(diff_sample_kernel, is_tnorm=is_tnorm, num_k=num_k)

    csize = jnp.dtype(compute_dtype).itemsize
    osize = jnp.dtype(x.dtype).itemsize
    block_bytes = ((tile_n * fin_block + 2 * fin_block * tile_out) * csize
                   + tile_n * tile_out * (osize + csize))
    # Small, explicit scoped-VMEM budget: safe on v5e/v6e and under v7x's
    # 64 MiB physical VMEM, with plenty of headroom for double-buffering.
    vmem_limit = int(min(32 * 2**20, max(16 * 2**20, 4 * block_bytes)))

    cost = pl.CostEstimate(
        flops=4 * n * fin * fout,
        transcendentals=0,
        bytes_accessed=int(x_c.size * csize + 2 * fin * fout * csize
                           + n * fout * osize))

    return pl.pallas_call(
        kern,
        out_shape=jax.ShapeDtypeStruct((n, fout), x.dtype),
        grid_spec=pltpu.PrefetchScalarGridSpec(
            num_scalar_prefetch=0,
            grid=grid,
            in_specs=[
                pl.BlockSpec((tile_n, fin_block), lambda i, j, k: (i, k)),
                pl.BlockSpec((fin_block, tile_out), lambda i, j, k: (k, j)),
                pl.BlockSpec((fin_block, tile_out), lambda i, j, k: (k, j)),
            ],
            out_specs=pl.BlockSpec((tile_n, tile_out),
                                   lambda i, j, k: (i, j)),
            scratch_shapes=[pltpu.VMEM((tile_n, tile_out), compute_dtype)],
        ),
        compiler_params=pltpu.CompilerParams(
            # TODO(synk): on v7x confirm "parallel" shards across both
            # TensorCores; otherwise use pltpu.CORE_PARALLEL on axes 0/1.
            dimension_semantics=("parallel", "parallel", "arbitrary"),
            vmem_limit_bytes=vmem_limit),
        cost_estimate=cost,
    )(x_c, a_t, b_t)


# ---------------------------------------------------------------------------
# Plain-JAX reference (mirror of the PyTorch forward) + self-test
# ---------------------------------------------------------------------------
def _reference_forward(x, edges, gumbel_key, operator, edge_types):
    idx = _gumbel_argmax(edges, gumbel_key)
    sel = jax.nn.one_hot(idx, len(edge_types), dtype=jnp.float32)  # (Fout,Fin,E)
    is_tnorm = isinstance(operator, T_Norm)
    offset = NO_EDGE_OFFSET_T_NORM if is_tnorm else NO_EDGE_OFFSET_T_CONORM
    vals = []
    for e in edge_types:
        if e == EdgeType.identity:
            vals.append(x)
        elif e == EdgeType.negation:
            vals.append(1.0 - x)
        else:
            vals.append(jnp.zeros_like(x) + offset)
    etv = jnp.stack(vals, axis=-1)                                  # (N,Fin,E)
    edge_values = jnp.max(sel[None, :, :, :] * etv[:, None, :, :], axis=-1)
    red = jnp.min if is_tnorm else jnp.max
    return red(edge_values, axis=-1)                                # (N,Fout)


if __name__ == "__main__":
    key = jax.random.PRNGKey(0)
    k_x, k_edges, k_gumbel = jax.random.split(key, 3)

    edge_types = [EdgeType.identity, EdgeType.negation, EdgeType.no_edge]
    fin, fout = 32, 256
    edges = jax.random.normal(k_edges, (fout, fin, len(edge_types)),
                              dtype=jnp.float32)

    # Case 1: tiny batch (single grid step), both operators.
    # Case 2: larger batch exercising the "parallel" num_samples grid axis.
    for n, operators in ((8, (T_Norm.godel, T_Conorm.godel)),
                         (256, (T_Norm.godel,))):
        x = jax.random.uniform(jax.random.fold_in(k_x, n), (n, fin),
                               dtype=jnp.float32)

        for operator in operators:
            ref = _reference_forward(x, edges, k_gumbel, operator, edge_types)
            out = diff_sample_forward(x, edges, k_gumbel, operator, edge_types,
                                      compute_dtype=jnp.float32)
            out = jax.block_until_ready(out)
            assert out.shape == (n, fout)
            assert jnp.allclose(out, ref, atol=1e-6), (n, operator, "f32")

        # Default compute dtype (bf16 on v6e/v7x, f32 elsewhere), looser check.
        ref = _reference_forward(x, edges, k_gumbel, T_Norm.godel, edge_types)
        out_d = jax.block_until_ready(
            diff_sample_forward(x, edges, k_gumbel, T_Norm.godel, edge_types))
        assert out_d.shape == (n, fout)
        assert jnp.allclose(out_d, ref, atol=2e-2), (n, "default-dtype")

    print("KERNEL_OK")
</pallas_src>

<mosaic_0001>
module attributes {stable_mosaic.version = 11 : i64} {
  func.func @diff_sample_kernel(%arg0: i32, %arg1: i32, %arg2: i32, %arg3: memref<8x32xf32, #tpu.memory_space<vmem>>, %arg4: memref<32x256xf32, #tpu.memory_space<vmem>>, %arg5: memref<32x256xf32, #tpu.memory_space<vmem>>, %arg6: memref<8x256xf32, #tpu.memory_space<vmem>>, %arg7: memref<8x256xf32, #tpu.memory_space<vmem>>) attributes {dimension_semantics = [#tpu.dimension_semantics<parallel>, #tpu.dimension_semantics<parallel>, #tpu.dimension_semantics<arbitrary>], iteration_bounds = array<i64: 1, 1, 1>, scalar_prefetch = 0 : i64, scratch_operands = 1 : i64, tpu.core_type = #tpu.core_type<tc>, window_params = [{transform_indices = @transform_0, window_bounds = array<i64: 8, 32>}, {transform_indices = @transform_1, window_bounds = array<i64: 32, 256>}, {transform_indices = @transform_2, window_bounds = array<i64: 32, 256>}, {transform_indices = @transform_3, window_bounds = array<i64: 8, 256>}]} {
    %c0 = arith.constant 0 : index
    %c0_0 = arith.constant 0 : index
    %0 = vector.load %arg3[%c0, %c0_0] : memref<8x32xf32, #tpu.memory_space<vmem>>, vector<8x1xf32>
    %c0_1 = arith.constant 0 : index
    %c0_2 = arith.constant 0 : index
    %1 = vector.load %arg4[%c0_1, %c0_2] : memref<32x256xf32, #tpu.memory_space<vmem>>, vector<1x256xf32>
    %2 = vector.broadcast %0 : vector<8x1xf32> to vector<8x256xf32>
    %3 = vector.broadcast %1 : vector<1x256xf32> to vector<8x256xf32>
    %4 = arith.mulf %2, %3 : vector<8x256xf32>
    %c0_3 = arith.constant 0 : index
    %c0_4 = arith.constant 0 : index
    %5 = vector.load %arg5[%c0_3, %c0_4] : memref<32x256xf32, #tpu.memory_space<vmem>>, vector<1x256xf32>
    %6 = vector.broadcast %5 : vector<1x256xf32> to vector<8x256xf32>
    %7 = arith.addf %4, %6 : vector<8x256xf32>
    %c0_5 = arith.constant 0 : index
    %c1 = arith.constant 1 : index
    %8 = vector.load %arg3[%c0_5, %c1] : memref<8x32xf32, #tpu.memory_space<vmem>>, vector<8x1xf32>
    %c1_6 = arith.constant 1 : index
    %c0_7 = arith.constant 0 : index
    %9 = vector.load %arg4[%c1_6, %c0_7] : memref<32x256xf32, #tpu.memory_space<vmem>>, vector<1x256xf32>
    %10 = vector.broadcast %8 : vector<8x1xf32> to vector<8x256xf32>
    %11 = vector.broadcast %9 : vector<1x256xf32> to vector<8x256xf32>
    %12 = arith.mulf %10, %11 : vector<8x256xf32>
    %c1_8 = arith.constant 1 : index
    %c0_9 = arith.constant 0 : index
    %13 = vector.load %arg5[%c1_8, %c0_9] : memref<32x256xf32, #tpu.memory_space<vmem>>, vector<1x256xf32>
    %14 = vector.broadcast %13 : vector<1x256xf32> to vector<8x256xf32>
    %15 = arith.addf %12, %14 : vector<8x256xf32>
    %16 = arith.minimumf %7, %15 : vector<8x256xf32>
    %c0_10 = arith.constant 0 : index
    %c2 = arith.constant 2 : index
    %17 = vector.load %arg3[%c0_10, %c2] : memref<8x32xf32, #tpu.memory_space<vmem>>, vector<8x1xf32>
    %c2_11 = arith.constant 2 : index
    %c0_12 = arith.constant 0 : index
    %18 = vector.load %arg4[%c2_11, %c0_12] : memref<32x256xf32, #tpu.memory_space<vmem>>, vector<1x256xf32>
    %19 = vector.broadcast %17 : vector<8x1xf32> to vector<8x256xf32>
    %20 = vector.broadcast %18 : vector<1x256xf32> to vector<8x256xf32>
    %21 = arith.mulf %19, %20 : vector<8x256xf32>
    %c2_13 = arith.constant 2 : index
    %c0_14 = arith.constant 0 : index
    %22 = vector.load %arg5[%c2_13, %c0_14] : memref<32x256xf32, #tpu.memory_space<vmem>>, vector<1x256xf32>
    %23 = vector.broadcast %22 : vector<1x256xf32> to vector<8x256xf32>
    %24 = arith.addf %21, %23 : vector<8x256xf32>
    %25 = arith.minimumf %16, %24 : vector<8x256xf32>
    %c0_15 = arith.constant 0 : index
    %c3 = arith.constant 3 : index
    %26 = vector.load %arg3[%c0_15, %c3] : memref<8x32xf32, #tpu.memory_space<vmem>>, vector<8x1xf32>
    %c3_16 = arith.constant 3 : index
    %c0_17 = arith.constant 0 : index
    %27 = vector.load %arg4[%c3_16, %c0_17] : memref<32x256xf32, #tpu.memory_space<vmem>>, vector<1x256xf32>
    %28 = vector.broadcast %26 : vector<8x1xf32> to vector<8x256xf32>
    %29 = vector.broadcast %27 : vector<1x256xf32> to vector<8x256xf32>
    %30 = arith.mulf %28, %29 : vector<8x256xf32>
    %c3_18 = arith.constant 3 : index
    %c0_19 = arith.constant 0 : index
    %31 = vector.load %arg5[%c3_18, %c0_19] : memref<32x256xf32, #tpu.memory_space<vmem>>, vector<1x256xf32>
    %32 = vector.broadcast %31 : vector<1x256xf32> to vector<8x256xf32>
    %33 = arith.addf %30, %32 : vector<8x256xf32>
    %34 = arith.minimumf %25, %33 : vector<8x256xf32>
    %c0_20 = arith.constant 0 : index
    %c4 = arith.constant 4 : index
    %35 = vector.load %arg3[%c0_20, %c4] : memref<8x32xf32, #tpu.memory_space<vmem>>, vector<8x1xf32>
    %c4_21 = arith.constant 4 : index
    %c0_22 = arith.constant 0 : index
    %36 = vector.load %arg4[%c4_21, %c0_22] : memref<32x256xf32, #tpu.memory_space<vmem>>, vector<1x256xf32>
    %37 = vector.broadcast %35 : vector<8x1xf32> to vector<8x256xf32>
    %38 = vector.broadcast %36 : vector<1x256xf32> to vector<8x256xf32>
    %39 = arith.mulf %37, %38 : vector<8x256xf32>
    %c4_23 = arith.constant 4 : index
    %c0_24 = arith.constant 0 : index
    %40 = vector.load %arg5[%c4_23, %c0_24] : memref<32x256xf32, #tpu.memory_space<vmem>>, vector<1x256xf32>
    %41 = vector.broadcast %40 : vector<1x256xf32> to vector<8x256xf32>
    %42 = arith.addf %39, %41 : vector<8x256xf32>
    %43 = arith.minimumf %34, %42 : vector<8x256xf32>
    %c0_25 = arith.constant 0 : index
    %c5 = arith.constant 5 : index
    %44 = vector.load %arg3[%c0_25, %c5] : memref<8x32xf32, #tpu.memory_space<vmem>>, vector<8x1xf32>
    %c5_26 = arith.constant 5 : index
    %c0_27 = arith.constant 0 : index
    %45 = vector.load %arg4[%c5_26, %c0_27] : memref<32x256xf32, #tpu.memory_space<vmem>>, vector<1x256xf32>
    %46 = vector.broadcast %44 : vector<8x1xf32> to vector<8x256xf32>
    %47 = vector.broadcast %45 : vector<1x256xf32> to vector<8x256xf32>
    %48 = arith.mulf %46, %47 : vector<8x256xf32>
    %c5_28 = arith.constant 5 : index
    %c0_29 = arith.constant 0 : index
    %49 = vector.load %arg5[%c5_28, %c0_29] : memref<32x256xf32, #tpu.memory_space<vmem>>, vector<1x256xf32>
    %50 = vector.broadcast %49 : vector<1x256xf32> to vector<8x256xf32>
    %51 = arith.addf %48, %50 : vector<8x256xf32>
    %52 = arith.minimumf %43, %51 : vector<8x256xf32>
    %c0_30 = arith.constant 0 : index
    %c6 = arith.constant 6 : index
    %53 = vector.load %arg3[%c0_30, %c6] : memref<8x32xf32, #tpu.memory_space<vmem>>, vector<8x1xf32>
    %c6_31 = arith.constant 6 : index
    %c0_32 = arith.constant 0 : index
    %54 = vector.load %arg4[%c6_31, %c0_32] : memref<32x256xf32, #tpu.memory_space<vmem>>, vector<1x256xf32>
    %55 = vector.broadcast %53 : vector<8x1xf32> to vector<8x256xf32>
    %56 = vector.broadcast %54 : vector<1x256xf32> to vector<8x256xf32>
    %57 = arith.mulf %55, %56 : vector<8x256xf32>
    %c6_33 = arith.constant 6 : index
    %c0_34 = arith.constant 0 : index
    %58 = vector.load %arg5[%c6_33, %c0_34] : memref<32x256xf32, #tpu.memory_space<vmem>>, vector<1x256xf32>
    %59 = vector.broadcast %58 : vector<1x256xf32> to vector<8x256xf32>
    %60 = arith.addf %57, %59 : vector<8x256xf32>
    %61 = arith.minimumf %52, %60 : vector<8x256xf32>
    %c0_35 = arith.constant 0 : index
    %c7 = arith.constant 7 : index
    %62 = vector.load %arg3[%c0_35, %c7] : memref<8x32xf32, #tpu.memory_space<vmem>>, vector<8x1xf32>
    %c7_36 = arith.constant 7 : index
    %c0_37 = arith.constant 0 : index
    %63 = vector.load %arg4[%c7_36, %c0_37] : memref<32x256xf32, #tpu.memory_space<vmem>>, vector<1x256xf32>
    %64 = vector.broadcast %62 : vector<8x1xf32> to vector<8x256xf32>
    %65 = vector.broadcast %63 : vector<1x256xf32> to vector<8x256xf32>
    %66 = arith.mulf %64, %65 : vector<8x256xf32>
    %c7_38 = arith.constant 7 : index
    %c0_39 = arith.constant 0 : index
    %67 = vector.load %arg5[%c7_38, %c0_39] : memref<32x256xf32, #tpu.memory_space<vmem>>, vector<1x256xf32>
    %68 = vector.broadcast %67 : vector<1x256xf32> to vector<8x256xf32>
    %69 = arith.addf %66, %68 : vector<8x256xf32>
    %70 = arith.minimumf %61, %69 : vector<8x256xf32>
    %c0_40 = arith.constant 0 : index
    %c8 = arith.constant 8 : index
    %71 = vector.load %arg3[%c0_40, %c8] : memref<8x32xf32, #tpu.memory_space<vmem>>, vector<8x1xf32>
    %c8_41 = arith.constant 8 : index
    %c0_42 = arith.constant 0 : index
    %72 = vector.load %arg4[%c8_41, %c0_42] : memref<32x256xf32, #tpu.memory_space<vmem>>, vector<1x256xf32>
    %73 = vector.broadcast %71 : vector<8x1xf32> to vector<8x256xf32>
    %74 = vector.broadcast %72 : vector<1x256xf32> to vector<8x256xf32>
    %75 = arith.mulf %73, %74 : vector<8x256xf32>
    %c8_43 = arith.constant 8 : index
    %c0_44 = arith.constant 0 : index
    %76 = vector.load %arg5[%c8_43, %c0_44] : memref<32x256xf32, #tpu.memory_space<vmem>>, vector<1x256xf32>
    %77 = vector.broadcast %76 : vector<1x256xf32> to vector<8x256xf32>
    %78 = arith.addf %75, %77 : vector<8x256xf32>
    %79 = arith.minimumf %70, %78 : vector<8x256xf32>
    %c0_45 = arith.constant 0 : index
    %c9 = arith.constant 9 : index
    %80 = vector.load %arg3[%c0_45, %c9] : memref<8x32xf32, #tpu.memory_space<vmem>>, vector<8x1xf32>
    %c9_46 = arith.constant 9 : index
    %c0_47 = arith.constant 0 : index
    %81 = vector.load %arg4[%c9_46, %c0_47] : memref<32x256xf32, #tpu.memory_space<vmem>>, vector<1x256xf32>
    %82 = vector.broadcast %80 : vector<8x1xf32> to vector<8x256xf32>
    %83 = vector.broadcast %81 : vector<1x256xf32> to vector<8x256xf32>
    %84 = arith.mulf %82, %83 : vector<8x256xf32>
    %c9_48 = arith.constant 9 : index
    %c0_49 = arith.constant 0 : index
    %85 = vector.load %arg5[%c9_48, %c0_49] : memref<32x256xf32, #tpu.memory_space<vmem>>, vector<1x256xf32>
    %86 = vector.broadcast %85 : vector<1x256xf32> to vector<8x256xf32>
    %87 = arith.addf %84, %86 : vector<8x256xf32>
    %88 = arith.minimumf %79, %87 : vector<8x256xf32>
    %c0_50 = arith.constant 0 : index
    %c10 = arith.constant 10 : index
    %89 = vector.load %arg3[%c0_50, %c10] : memref<8x32xf32, #tpu.memory_space<vmem>>, vector<8x1xf32>
    %c10_51 = arith.constant 10 : index
    %c0_52 = arith.constant 0 : index
    %90 = vector.load %arg4[%c10_51, %c0_52] : memref<32x256xf32, #tpu.memory_space<vmem>>, vector<1x256xf32>
    %91 = vector.broadcast %89 : vector<8x1xf32> to vector<8x256xf32>
    %92 = vector.broadcast %90 : vector<1x256xf32> to vector<8x256xf32>
    %93 = arith.mulf %91, %92 : vector<8x256xf32>
    %c10_53 = arith.constant 10 : index
    %c0_54 = arith.constant 0 : index
    %94 = vector.load %arg5[%c10_53, %c0_54] : memref<32x256xf32, #tpu.memory_space<vmem>>, vector<1x256xf32>
    %95 = vector.broadcast %94 : vector<1x256xf32> to vector<8x256xf32>
    %96 = arith.addf %93, %95 : vector<8x256xf32>
    %97 = arith.minimumf %88, %96 : vector<8x256xf32>
    %c0_55 = arith.constant 0 : index
    %c11 = arith.constant 11 : index
    %98 = vector.load %arg3[%c0_55, %c11] : memref<8x32xf32, #tpu.memory_space<vmem>>, vector<8x1xf32>
    %c11_56 = arith.constant 11 : index
    %c0_57 = arith.constant 0 : index
    %99 = vector.load %arg4[%c11_56, %c0_57] : memref<32x256xf32, #tpu.memory_space<vmem>>, vector<1x256xf32>
    %100 = vector.broadcast %98 : vector<8x1xf32> to vector<8x256xf32>
    %101 = vector.broadcast %99 : vector<1x256xf32> to vector<8x256xf32>
    %102 = arith.mulf %100, %101 : vector<8x256xf32>
    %c11_58 = arith.constant 11 : index
    %c0_59 = arith.constant 0 : index
    %103 = vector.load %arg5[%c11_58, %c0_59] : memref<32x256xf32, #tpu.memory_space<vmem>>, vector<1x256xf32>
    %104 = vector.broadcast %103 : vector<1x256xf32> to vector<8x256xf32>
    %105 = arith.addf %102, %104 : vector<8x256xf32>
    %106 = arith.minimumf %97, %105 : vector<8x256xf32>
    %c0_60 = arith.constant 0 : index
    %c12 = arith.constant 12 : index
    %107 = vector.load %arg3[%c0_60, %c12] : memref<8x32xf32, #tpu.memory_space<vmem>>, vector<8x1xf32>
    %c12_61 = arith.constant 12 : index
    %c0_62 = arith.constant 0 : index
    %108 = vector.load %arg4[%c12_61, %c0_62] : memref<32x256xf32, #tpu.memory_space<vmem>>, vector<1x256xf32>
    %109 = vector.broadcast %107 : vector<8x1xf32> to vector<8x256xf32>
    %110 = vector.broadcast %108 : vector<1x256xf32> to vector<8x256xf32>
    %111 = arith.mulf %109, %110 : vector<8x256xf32>
    %c12_63 = arith.constant 12 : index
    %c0_64 = arith.constant 0 : index
    %112 = vector.load %arg5[%c12_63, %c0_64] : memref<32x256xf32, #tpu.memory_space<vmem>>, vector<1x256xf32>
    %113 = vector.broadcast %112 : vector<1x256xf32> to vector<8x256xf32>
    %114 = arith.addf %111, %113 : vector<8x256xf32>
    %115 = arith.minimumf %106, %114 : vector<8x256xf32>
    %c0_65 = arith.constant 0 : index
    %c13 = arith.constant 13 : index
    %116 = vector.load %arg3[%c0_65, %c13] : memref<8x32xf32, #tpu.memory_space<vmem>>, vector<8x1xf32>
    %c13_66 = arith.constant 13 : index
    %c0_67 = arith.constant 0 : index
    %117 = vector.load %arg4[%c13_66, %c0_67] : memref<32x256xf32, #tpu.memory_space<vmem>>, vector<1x256xf32>
    %118 = vector.broadcast %116 : vector<8x1xf32> to vector<8x256xf32>
    %119 = vector.broadcast %117 : vector<1x256xf32> to vector<8x256xf32>
    %120 = arith.mulf %118, %119 : vector<8x256xf32>
    %c13_68 = arith.constant 13 : index
    %c0_69 = arith.constant 0 : index
    %121 = vector.load %arg5[%c13_68, %c0_69] : memref<32x256xf32, #tpu.memory_space<vmem>>, vector<1x256xf32>
    %122 = vector.broadcast %121 : vector<1x256xf32> to vector<8x256xf32>
    %123 = arith.addf %120, %122 : vector<8x256xf32>
    %124 = arith.minimumf %115, %123 : vector<8x256xf32>
    %c0_70 = arith.constant 0 : index
    %c14 = arith.constant 14 : index
    %125 = vector.load %arg3[%c0_70, %c14] : memref<8x32xf32, #tpu.memory_space<vmem>>, vector<8x1xf32>
    %c14_71 = arith.constant 14 : index
    %c0_72 = arith.constant 0 : index
    %126 = vector.load %arg4[%c14_71, %c0_72] : memref<32x256xf32, #tpu.memory_space<vmem>>, vector<1x256xf32>
    %127 = vector.broadcast %125 : vector<8x1xf32> to vector<8x256xf32>
    %128 = vector.broadcast %126 : vector<1x256xf32> to vector<8x256xf32>
    %129 = arith.mulf %127, %128 : vector<8x256xf32>
    %c14_73 = arith.constant 14 : index
    %c0_74 = arith.constant 0 : index
    %130 = vector.load %arg5[%c14_73, %c0_74] : memref<32x256xf32, #tpu.memory_space<vmem>>, vector<1x256xf32>
    %131 = vector.broadcast %130 : vector<1x256xf32> to vector<8x256xf32>
    %132 = arith.addf %129, %131 : vector<8x256xf32>
    %133 = arith.minimumf %124, %132 : vector<8x256xf32>
    %c0_75 = arith.constant 0 : index
    %c15 = arith.constant 15 : index
    %134 = vector.load %arg3[%c0_75, %c15] : memref<8x32xf32, #tpu.memory_space<vmem>>, vector<8x1xf32>
    %c15_76 = arith.constant 15 : index
    %c0_77 = arith.constant 0 : index
    %135 = vector.load %arg4[%c15_76, %c0_77] : memref<32x256xf32, #tpu.memory_space<vmem>>, vector<1x256xf32>
    %136 = vector.broadcast %134 : vector<8x1xf32> to vector<8x256xf32>
    %137 = vector.broadcast %135 : vector<1x256xf32> to vector<8x256xf32>
    %138 = arith.mulf %136, %137 : vector<8x256xf32>
    %c15_78 = arith.constant 15 : index
    %c0_79 = arith.constant 0 : index
    %139 = vector.load %arg5[%c15_78, %c0_79] : memref<32x256xf32, #tpu.memory_space<vmem>>, vector<1x256xf32>
    %140 = vector.broadcast %139 : vector<1x256xf32> to vector<8x256xf32>
    %141 = arith.addf %138, %140 : vector<8x256xf32>
    %142 = arith.minimumf %133, %141 : vector<8x256xf32>
    %c0_80 = arith.constant 0 : index
    %c16 = arith.constant 16 : index
    %143 = vector.load %arg3[%c0_80, %c16] : memref<8x32xf32, #tpu.memory_space<vmem>>, vector<8x1xf32>
    %c16_81 = arith.constant 16 : index
    %c0_82 = arith.constant 0 : index
    %144 = vector.load %arg4[%c16_81, %c0_82] : memref<32x256xf32, #tpu.memory_space<vmem>>, vector<1x256xf32>
    %145 = vector.broadcast %143 : vector<8x1xf32> to vector<8x256xf32>
    %146 = vector.broadcast %144 : vector<1x256xf32> to vector<8x256xf32>
    %147 = arith.mulf %145, %146 : vector<8x256xf32>
    %c16_83 = arith.constant 16 : index
    %c0_84 = arith.constant 0 : index
    %148 = vector.load %arg5[%c16_83, %c0_84] : memref<32x256xf32, #tpu.memory_space<vmem>>, vector<1x256xf32>
    %149 = vector.broadcast %148 : vector<1x256xf32> to vector<8x256xf32>
    %150 = arith.addf %147, %149 : vector<8x256xf32>
    %151 = arith.minimumf %142, %150 : vector<8x256xf32>
    %c0_85 = arith.constant 0 : index
    %c17 = arith.constant 17 : index
    %152 = vector.load %arg3[%c0_85, %c17] : memref<8x32xf32, #tpu.memory_space<vmem>>, vector<8x1xf32>
    %c17_86 = arith.constant 17 : index
    %c0_87 = arith.constant 0 : index
    %153 = vector.load %arg4[%c17_86, %c0_87] : memref<32x256xf32, #tpu.memory_space<vmem>>, vector<1x256xf32>
    %154 = vector.broadcast %152 : vector<8x1xf32> to vector<8x256xf32>
    %155 = vector.broadcast %153 : vector<1x256xf32> to vector<8x256xf32>
    %156 = arith.mulf %154, %155 : vector<8x256xf32>
    %c17_88 = arith.constant 17 : index
    %c0_89 = arith.constant 0 : index
    %157 = vector.load %arg5[%c17_88, %c0_89] : memref<32x256xf32, #tpu.memory_space<vmem>>, vector<1x256xf32>
    %158 = vector.broadcast %157 : vector<1x256xf32> to vector<8x256xf32>
    %159 = arith.addf %156, %158 : vector<8x256xf32>
    %160 = arith.minimumf %151, %159 : vector<8x256xf32>
    %c0_90 = arith.constant 0 : index
    %c18 = arith.constant 18 : index
    %161 = vector.load %arg3[%c0_90, %c18] : memref<8x32xf32, #tpu.memory_space<vmem>>, vector<8x1xf32>
    %c18_91 = arith.constant 18 : index
    %c0_92 = arith.constant 0 : index
    %162 = vector.load %arg4[%c18_91, %c0_92] : memref<32x256xf32, #tpu.memory_space<vmem>>, vector<1x256xf32>
    %163 = vector.broadcast %161 : vector<8x1xf32> to vector<8x256xf32>
    %164 = vector.broadcast %162 : vector<1x256xf32> to vector<8x256xf32>
    %165 = arith.mulf %163, %164 : vector<8x256xf32>
    %c18_93 = arith.constant 18 : index
    %c0_94 = arith.constant 0 : index
    %166 = vector.load %arg5[%c18_93, %c0_94] : memref<32x256xf32, #tpu.memory_space<vmem>>, vector<1x256xf32>
    %167 = vector.broadcast %166 : vector<1x256xf32> to vector<8x256xf32>
    %168 = arith.addf %165, %167 : vector<8x256xf32>
    %169 = arith.minimumf %160, %168 : vector<8x256xf32>
    %c0_95 = arith.constant 0 : index
    %c19 = arith.constant 19 : index
    %170 = vector.load %arg3[%c0_95, %c19] : memref<8x32xf32, #tpu.memory_space<vmem>>, vector<8x1xf32>
    %c19_96 = arith.constant 19 : index
    %c0_97 = arith.constant 0 : index
    %171 = vector.load %arg4[%c19_96, %c0_97] : memref<32x256xf32, #tpu.memory_space<vmem>>, vector<1x256xf32>
    %172 = vector.broadcast %170 : vector<8x1xf32> to vector<8x256xf32>
    %173 = vector.broadcast %171 : vector<1x256xf32> to vector<8x256xf32>
    %174 = arith.mulf %172, %173 : vector<8x256xf32>
    %c19_98 = arith.constant 19 : index
    %c0_99 = arith.constant 0 : index
    %175 = vector.load %arg5[%c19_98, %c0_99] : memref<32x256xf32, #tpu.memory_space<vmem>>, vector<1x256xf32>
    %176 = vector.broadcast %175 : vector<1x256xf32> to vector<8x256xf32>
    %177 = arith.addf %174, %176 : vector<8x256xf32>
    %178 = arith.minimumf %169, %177 : vector<8x256xf32>
    %c0_100 = arith.constant 0 : index
    %c20 = arith.constant 20 : index
    %179 = vector.load %arg3[%c0_100, %c20] : memref<8x32xf32, #tpu.memory_space<vmem>>, vector<8x1xf32>
    %c20_101 = arith.constant 20 : index
    %c0_102 = arith.constant 0 : index
    %180 = vector.load %arg4[%c20_101, %c0_102] : memref<32x256xf32, #tpu.memory_space<vmem>>, vector<1x256xf32>
    %181 = vector.broadcast %179 : vector<8x1xf32> to vector<8x256xf32>
    %182 = vector.broadcast %180 : vector<1x256xf32> to vector<8x256xf32>
    %183 = arith.mulf %181, %182 : vector<8x256xf32>
    %c20_103 = arith.constant 20 : index
    %c0_104 = arith.constant 0 : index
    %184 = vector.load %arg5[%c20_103, %c0_104] : memref<32x256xf32, #tpu.memory_space<vmem>>, vector<1x256xf32>
    %185 = vector.broadcast %184 : vector<1x256xf32> to vector<8x256xf32>
    %186 = arith.addf %183, %185 : vector<8x256xf32>
    %187 = arith.minimumf %178, %186 : vector<8x256xf32>
    %c0_105 = arith.constant 0 : index
    %c21 = arith.constant 21 : index
    %188 = vector.load %arg3[%c0_105, %c21] : memref<8x32xf32, #tpu.memory_space<vmem>>, vector<8x1xf32>
    %c21_106 = arith.constant 21 : index
    %c0_107 = arith.constant 0 : index
    %189 = vector.load %arg4[%c21_106, %c0_107] : memref<32x256xf32, #tpu.memory_space<vmem>>, vector<1x256xf32>
    %190 = vector.broadcast %188 : vector<8x1xf32> to vector<8x256xf32>
    %191 = vector.broadcast %189 : vector<1x256xf32> to vector<8x256xf32>
    %192 = arith.mulf %190, %191 : vector<8x256xf32>
    %c21_108 = arith.constant 21 : index
    %c0_109 = arith.constant 0 : index
    %193 = vector.load %arg5[%c21_108, %c0_109] : memref<32x256xf32, #tpu.memory_space<vmem>>, vector<1x256xf32>
    %194 = vector.broadcast %193 : vector<1x256xf32> to vector<8x256xf32>
    %195 = arith.addf %192, %194 : vector<8x256xf32>
    %196 = arith.minimumf %187, %195 : vector<8x256xf32>
    %c0_110 = arith.constant 0 : index
    %c22 = arith.constant 22 : index
    %197 = vector.load %arg3[%c0_110, %c22] : memref<8x32xf32, #tpu.memory_space<vmem>>, vector<8x1xf32>
    %c22_111 = arith.constant 22 : index
    %c0_112 = arith.constant 0 : index
    %198 = vector.load %arg4[%c22_111, %c0_112] : memref<32x256xf32, #tpu.memory_space<vmem>>, vector<1x256xf32>
    %199 = vector.broadcast %197 : vector<8x1xf32> to vector<8x256xf32>
    %200 = vector.broadcast %198 : vector<1x256xf32> to vector<8x256xf32>
    %201 = arith.mulf %199, %200 : vector<8x256xf32>
    %c22_113 = arith.constant 22 : index
    %c0_114 = arith.constant 0 : index
    %202 = vector.load %arg5[%c22_113, %c0_114] : memref<32x256xf32, #tpu.memory_space<vmem>>, vector<1x256xf32>
    %203 = vector.broadcast %202 : vector<1x256xf32> to vector<8x256xf32>
    %204 = arith.addf %201, %203 : vector<8x256xf32>
    %205 = arith.minimumf %196, %204 : vector<8x256xf32>
    %c0_115 = arith.constant 0 : index
    %c23 = arith.constant 23 : index
    %206 = vector.load %arg3[%c0_115, %c23] : memref<8x32xf32, #tpu.memory_space<vmem>>, vector<8x1xf32>
    %c23_116 = arith.constant 23 : index
    %c0_117 = arith.constant 0 : index
    %207 = vector.load %arg4[%c23_116, %c0_117] : memref<32x256xf32, #tpu.memory_space<vmem>>, vector<1x256xf32>
    %208 = vector.broadcast %206 : vector<8x1xf32> to vector<8x256xf32>
    %209 = vector.broadcast %207 : vector<1x256xf32> to vector<8x256xf32>
    %210 = arith.mulf %208, %209 : vector<8x256xf32>
    %c23_118 = arith.constant 23 : index
    %c0_119 = arith.constant 0 : index
    %211 = vector.load %arg5[%c23_118, %c0_119] : memref<32x256xf32, #tpu.memory_space<vmem>>, vector<1x256xf32>
    %212 = vector.broadcast %211 : vector<1x256xf32> to vector<8x256xf32>
    %213 = arith.addf %210, %212 : vector<8x256xf32>
    %214 = arith.minimumf %205, %213 : vector<8x256xf32>
    %c0_120 = arith.constant 0 : index
    %c24 = arith.constant 24 : index
    %215 = vector.load %arg3[%c0_120, %c24] : memref<8x32xf32, #tpu.memory_space<vmem>>, vector<8x1xf32>
    %c24_121 = arith.constant 24 : index
    %c0_122 = arith.constant 0 : index
    %216 = vector.load %arg4[%c24_121, %c0_122] : memref<32x256xf32, #tpu.memory_space<vmem>>, vector<1x256xf32>
    %217 = vector.broadcast %215 : vector<8x1xf32> to vector<8x256xf32>
    %218 = vector.broadcast %216 : vector<1x256xf32> to vector<8x256xf32>
    %219 = arith.mulf %217, %218 : vector<8x256xf32>
    %c24_123 = arith.constant 24 : index
    %c0_124 = arith.constant 0 : index
    %220 = vector.load %arg5[%c24_123, %c0_124] : memref<32x256xf32, #tpu.memory_space<vmem>>, vector<1x256xf32>
    %221 = vector.broadcast %220 : vector<1x256xf32> to vector<8x256xf32>
    %222 = arith.addf %219, %221 : vector<8x256xf32>
    %223 = arith.minimumf %214, %222 : vector<8x256xf32>
    %c0_125 = arith.constant 0 : index
    %c25 = arith.constant 25 : index
    %224 = vector.load %arg3[%c0_125, %c25] : memref<8x32xf32, #tpu.memory_space<vmem>>, vector<8x1xf32>
    %c25_126 = arith.constant 25 : index
    %c0_127 = arith.constant 0 : index
    %225 = vector.load %arg4[%c25_126, %c0_127] : memref<32x256xf32, #tpu.memory_space<vmem>>, vector<1x256xf32>
    %226 = vector.broadcast %224 : vector<8x1xf32> to vector<8x256xf32>
    %227 = vector.broadcast %225 : vector<1x256xf32> to vector<8x256xf32>
    %228 = arith.mulf %226, %227 : vector<8x256xf32>
    %c25_128 = arith.constant 25 : index
    %c0_129 = arith.constant 0 : index
    %229 = vector.load %arg5[%c25_128, %c0_129] : memref<32x256xf32, #tpu.memory_space<vmem>>, vector<1x256xf32>
    %230 = vector.broadcast %229 : vector<1x256xf32> to vector<8x256xf32>
    %231 = arith.addf %228, %230 : vector<8x256xf32>
    %232 = arith.minimumf %223, %231 : vector<8x256xf32>
    %c0_130 = arith.constant 0 : index
    %c26 = arith.constant 26 : index
    %233 = vector.load %arg3[%c0_130, %c26] : memref<8x32xf32, #tpu.memory_space<vmem>>, vector<8x1xf32>
    %c26_131 = arith.constant 26 : index
    %c0_132 = arith.constant 0 : index
    %234 = vector.load %arg4[%c26_131, %c0_132] : memref<32x256xf32, #tpu.memory_space<vmem>>, vector<1x256xf32>
    %235 = vector.broadcast %233 : vector<8x1xf32> to vector<8x256xf32>
    %236 = vector.broadcast %234 : vector<1x256xf32> to vector<8x256xf32>
    %237 = arith.mulf %235, %236 : vector<8x256xf32>
    %c26_133 = arith.constant 26 : index
    %c0_134 = arith.constant 0 : index
    %238 = vector.load %arg5[%c26_133, %c0_134] : memref<32x256xf32, #tpu.memory_space<vmem>>, vector<1x256xf32>
    %239 = vector.broadcast %238 : vector<1x256xf32> to vector<8x256xf32>
    %240 = arith.addf %237, %239 : vector<8x256xf32>
    %241 = arith.minimumf %232, %240 : vector<8x256xf32>
    %c0_135 = arith.constant 0 : index
    %c27 = arith.constant 27 : index
    %242 = vector.load %arg3[%c0_135, %c27] : memref<8x32xf32, #tpu.memory_space<vmem>>, vector<8x1xf32>
    %c27_136 = arith.constant 27 : index
    %c0_137 = arith.constant 0 : index
    %243 = vector.load %arg4[%c27_136, %c0_137] : memref<32x256xf32, #tpu.memory_space<vmem>>, vector<1x256xf32>
    %244 = vector.broadcast %242 : vector<8x1xf32> to vector<8x256xf32>
    %245 = vector.broadcast %243 : vector<1x256xf32> to vector<8x256xf32>
    %246 = arith.mulf %244, %245 : vector<8x256xf32>
    %c27_138 = arith.constant 27 : index
    %c0_139 = arith.constant 0 : index
    %247 = vector.load %arg5[%c27_138, %c0_139] : memref<32x256xf32, #tpu.memory_space<vmem>>, vector<1x256xf32>
    %248 = vector.broadcast %247 : vector<1x256xf32> to vector<8x256xf32>
    %249 = arith.addf %246, %248 : vector<8x256xf32>
    %250 = arith.minimumf %241, %249 : vector<8x256xf32>
    %c0_140 = arith.constant 0 : index
    %c28 = arith.constant 28 : index
    %251 = vector.load %arg3[%c0_140, %c28] : memref<8x32xf32, #tpu.memory_space<vmem>>, vector<8x1xf32>
    %c28_141 = arith.constant 28 : index
    %c0_142 = arith.constant 0 : index
    %252 = vector.load %arg4[%c28_141, %c0_142] : memref<32x256xf32, #tpu.memory_space<vmem>>, vector<1x256xf32>
    %253 = vector.broadcast %251 : vector<8x1xf32> to vector<8x256xf32>
    %254 = vector.broadcast %252 : vector<1x256xf32> to vector<8x256xf32>
    %255 = arith.mulf %253, %254 : vector<8x256xf32>
    %c28_143 = arith.constant 28 : index
    %c0_144 = arith.constant 0 : index
    %256 = vector.load %arg5[%c28_143, %c0_144] : memref<32x256xf32, #tpu.memory_space<vmem>>, vector<1x256xf32>
    %257 = vector.broadcast %256 : vector<1x256xf32> to vector<8x256xf32>
    %258 = arith.addf %255, %257 : vector<8x256xf32>
    %259 = arith.minimumf %250, %258 : vector<8x256xf32>
    %c0_145 = arith.constant 0 : index
    %c29 = arith.constant 29 : index
    %260 = vector.load %arg3[%c0_145, %c29] : memref<8x32xf32, #tpu.memory_space<vmem>>, vector<8x1xf32>
    %c29_146 = arith.constant 29 : index
    %c0_147 = arith.constant 0 : index
    %261 = vector.load %arg4[%c29_146, %c0_147] : memref<32x256xf32, #tpu.memory_space<vmem>>, vector<1x256xf32>
    %262 = vector.broadcast %260 : vector<8x1xf32> to vector<8x256xf32>
    %263 = vector.broadcast %261 : vector<1x256xf32> to vector<8x256xf32>
    %264 = arith.mulf %262, %263 : vector<8x256xf32>
    %c29_148 = arith.constant 29 : index
    %c0_149 = arith.constant 0 : index
    %265 = vector.load %arg5[%c29_148, %c0_149] : memref<32x256xf32, #tpu.memory_space<vmem>>, vector<1x256xf32>
    %266 = vector.broadcast %265 : vector<1x256xf32> to vector<8x256xf32>
    %267 = arith.addf %264, %266 : vector<8x256xf32>
    %268 = arith.minimumf %259, %267 : vector<8x256xf32>
    %c0_150 = arith.constant 0 : index
    %c30 = arith.constant 30 : index
    %269 = vector.load %arg3[%c0_150, %c30] : memref<8x32xf32, #tpu.memory_space<vmem>>, vector<8x1xf32>
    %c30_151 = arith.constant 30 : index
    %c0_152 = arith.constant 0 : index
    %270 = vector.load %arg4[%c30_151, %c0_152] : memref<32x256xf32, #tpu.memory_space<vmem>>, vector<1x256xf32>
    %271 = vector.broadcast %269 : vector<8x1xf32> to vector<8x256xf32>
    %272 = vector.broadcast %270 : vector<1x256xf32> to vector<8x256xf32>
    %273 = arith.mulf %271, %272 : vector<8x256xf32>
    %c30_153 = arith.constant 30 : index
    %c0_154 = arith.constant 0 : index
    %274 = vector.load %arg5[%c30_153, %c0_154] : memref<32x256xf32, #tpu.memory_space<vmem>>, vector<1x256xf32>
    %275 = vector.broadcast %274 : vector<1x256xf32> to vector<8x256xf32>
    %276 = arith.addf %273, %275 : vector<8x256xf32>
    %277 = arith.minimumf %268, %276 : vector<8x256xf32>
    %c0_155 = arith.constant 0 : index
    %c31 = arith.constant 31 : index
    %278 = vector.load %arg3[%c0_155, %c31] : memref<8x32xf32, #tpu.memory_space<vmem>>, vector<8x1xf32>
    %c31_156 = arith.constant 31 : index
    %c0_157 = arith.constant 0 : index
    %279 = vector.load %arg4[%c31_156, %c0_157] : memref<32x256xf32, #tpu.memory_space<vmem>>, vector<1x256xf32>
    %280 = vector.broadcast %278 : vector<8x1xf32> to vector<8x256xf32>
    %281 = vector.broadcast %279 : vector<1x256xf32> to vector<8x256xf32>
    %282 = arith.mulf %280, %281 : vector<8x256xf32>
    %c31_158 = arith.constant 31 : index
    %c0_159 = arith.constant 0 : index
    %283 = vector.load %arg5[%c31_158, %c0_159] : memref<32x256xf32, #tpu.memory_space<vmem>>, vector<1x256xf32>
    %284 = vector.broadcast %283 : vector<1x256xf32> to vector<8x256xf32>
    %285 = arith.addf %282, %284 : vector<8x256xf32>
    %286 = arith.minimumf %277, %285 : vector<8x256xf32>
    %cst = arith.constant 0.000000e+00 : f32
    %287 = vector.broadcast %cst : f32 to vector<8x256xf32>
    %288 = arith.maximumf %286, %287 : vector<8x256xf32>
    %c0_160 = arith.constant 0 : index
    %c0_161 = arith.constant 0 : index
    %289 = vector.load %arg6[%c0_160, %c0_161] : memref<8x256xf32, #tpu.memory_space<vmem>>, vector<8x256xf32>
    tpu.vector_store %arg6[%c0_160, %c0_161], %288 {strides = array<i32>} : memref<8x256xf32, #tpu.memory_space<vmem>>, vector<8x256xf32>,
    return
  }
  func.func @transform_0(%arg0: i32, %arg1: i32, %arg2: i32) -> (i32, i32) {
    %c0_i32 = arith.constant 0 : i32
    return %arg0, %arg2 : i32, i32
  }
  func.func @transform_1(%arg0: i32, %arg1: i32, %arg2: i32) -> (i32, i32) {
    %c0_i32 = arith.constant 0 : i32
    return %arg2, %arg1 : i32, i32
  }
  func.func @transform_2(%arg0: i32, %arg1: i32, %arg2: i32) -> (i32, i32) {
    %c0_i32 = arith.constant 0 : i32
    return %arg2, %arg1 : i32, i32
  }
  func.func @transform_3(%arg0: i32, %arg1: i32, %arg2: i32) -> (i32, i32) {
    %c0_i32 = arith.constant 0 : i32
    return %arg0, %arg1 : i32, i32
  }
}

</mosaic_0001>

<bundles_post_ra>
// kernel: tpu_custom_call.1
= control target key start
LH: loop header
LB: loop body
LE: loop exit
PB: predicated region body
PF: predicated region fallthrough
CT: control target
= control target key end

     0   :  { %8 = vsyncpa [#allocation4], 0  ;;  %s1617_s0 = inlined_call_operand.hbm [shape: f32[8,32], index: 0, kind: input, shape index: {}]   ;;  %s1618_s1 = inlined_call_operand.hbm [shape: f32[32,256], index: 1, kind: input, shape index: {}]   ;;  %s1619_s2 = inlined_call_operand.hbm [shape: f32[32,256], index: 2, kind: input, shape index: {}]   ;;  %s1620_s3 = inlined_call_operand.hbm [shape: f32[8,256], index: 3, kind: output, shape index: {}]  }
   0x1   :  { %9 = vsyncpa [#allocation7], 0 }
   0x2   :  { %10 = vsyncpa [#allocation5], 0  ;;  %s1381_s12 = smov [#allocation6]  }
   0x3   :  { %s26_s13 = sshll.u32 %s1381_s12, 4  ;;  %s27_s13 = int_to_ptr.vmem [resolvable:$true] %s26_s13 }
   0x4   :  { %s1303_s14 = scalar_lea.vmem %s27_s13, 1024  ;;  %p1308_p1 = scmp.lt.s32.totalorder %s27_s13, %s27_s13 }
   0x5   :  { %p1304_p0 = scmp.ne.s32.totalorder %s27_s13, %s1303_s14  ;;  %p1309_p2 = scmp.lt.s32.totalorder %s1303_s14, %s1303_s14 }
   0x7   :  { %p1310_p3 = por %p1309_p2, %p1308_p1 }
   0x9   :  { %p1311_p4 = pnand %p1310_p3, %p1304_p0 }
   0xb   :  { %1314 = shalt.err (!%p1311_p4)
}
   0xc   :  { %s1382_s15 = smov 256   ;;  %s1383_s16 = smov 16  }
   0xd   :  { %32 = dma.hbm_to_vmem [thread:$0]  %s1618_s1, 1024, %s27_s13, [#allocation7], %s1382_s15, %s1382_s15, %s1383_s16  }
   0xe   :  { %s1384_s19 = smov [#allocation3]   ;;  %s1385_s21 = smov [#allocation8]  }
   0xf   :  { %s17_s20 = sshll.u32 %s1384_s19, 4  ;;  %s38_s22 = sshll.u32 %s1385_s21, 4  ;;  %s18_s20 = int_to_ptr.vmem [resolvable:$true] %s17_s20  ;;  %s39_s22 = int_to_ptr.vmem [resolvable:$true] %s38_s22 }
  0x10   :  { %s1323_s23 = scalar_lea.vmem %s18_s20, 128  ;;  %p1328_p6 = scmp.lt.s32.totalorder %s18_s20, %s18_s20 }
  0x11   :  { %p1324_p5 = scmp.ne.s32.totalorder %s18_s20, %s1323_s23  ;;  %p1329_p7 = scmp.lt.s32.totalorder %s1323_s23, %s1323_s23 }
  0x13   :  { %p1330_p8 = por %p1329_p7, %p1328_p6 }
  0x15   :  { %p1331_p9 = pnand %p1330_p8, %p1324_p5 }
  0x17   :  { %1334 = shalt.err (!%p1331_p9)
}
  0x18   :  { %20 = dma.hbm_to_vmem [thread:$0]  %s1617_s0, 128, %s18_s20, [#allocation4]  }
  0x19   :  { %s1343_s26 = scalar_lea.vmem %s39_s22, 1024  ;;  %p1348_p11 = scmp.lt.s32.totalorder %s39_s22, %s39_s22 }
  0x1a   :  { %p1344_p10 = scmp.ne.s32.totalorder %s39_s22, %s1343_s26  ;;  %p1349_p12 = scmp.lt.s32.totalorder %s1343_s26, %s1343_s26 }
  0x1c   :  { %p1350_p13 = por %p1349_p12, %p1348_p11 }
  0x1e   :  { %p1351_p0 = pnand %p1350_p13, %p1344_p10 }
  0x20   :  { %1354 = shalt.err (!%p1351_p0)
}
  0x21   :  { %44 = dma.hbm_to_vmem [thread:$0]  %s1619_s2, 1024, %s39_s22, [#allocation7], %s1382_s15, %s1382_s15, %s1383_s16  }
  0x22   :  { %1375 = dma.done.wait [#allocation4], 128  }
  0x23   :  { %1376 = vsyncadd [#allocation4], 4294967168 }
  0x24   :  { %1377 = dma.done.wait [#allocation7], 2048  }
  0x25   :  { %1378 = vsyncadd [#allocation7], 4294965248  ;;  %v1386_v0 = vmov 2   ;;  %v1387_v1 = vmov 0   ;;  %v1448_v2 = vld [vmem:[#allocation3] sm:$0xff]  ;;  %v1388_v3 = vmov 3   ;;  %v62_v33 = vlaneseq }
  0x26   :  { %1264 = vset.pattern.permute.xlu1 %v1386_v0  ;;  %1262 = vset.pattern.permute.xlu0 %v1387_v1  ;;  %v1389_v4 = vmov 1   ;;  %v1390_v5 = vmov 4   ;;  %v1391_v6 = vmov 5   ;;  %v1392_v7 = vmov 6   ;;  %s1418_s0 = smov [#allocation9]  }
  0x27   :  { %127 = vperm.xlu1 %1264, %v1448_v2   ;;  %58 = vperm.xlu0 %1262, %v1448_v2   ;;  %v1393_v8 = vmov 8   ;;  %v1394_v9 = vmov 7   ;;  %v1395_v10 = vmov 11   ;;  %v1396_v11 = vmov 9   ;;  %s1214_s2 = sshll.u32 %s1418_s0, 4  ;;  %s1215_s2 = int_to_ptr.vmem [resolvable:$true] %s1214_s2 }
  0x28   :  { %v1397_v12 = vmov 14   ;;  %v1398_v13 = vmov 10   ;;  %v1399_v14 = vmov 17   ;;  %v1400_v15 = vmov 12   ;;  %s1355_s28 = scalar_lea.vmem %s1215_s2, 256  ;;  %p1360_p2 = scmp.lt.s32.totalorder %s1215_s2, %s1215_s2 }
  0x29   :  { %v1401_v16 = vmov 20   ;;  %v1402_v17 = vmov 13   ;;  %v1403_v18 = vmov 23   ;;  %v1404_v19 = vmov 15   ;;  %p1356_p1 = scmp.ne.s32.totalorder %s1215_s2, %s1355_s28  ;;  %p1361_p3 = scmp.lt.s32.totalorder %s1355_s28, %s1355_s28 }
  0x2a   :  { %v1405_v20 = vmov 26   ;;  %v1406_v21 = vmov 16   ;;  %v1407_v22 = vmov 29   ;;  %v1408_v23 = vmov 18  }
  0x2b   :  { %1265 = vset.pattern.permute.xlu1 %v1388_v3  ;;  %1263 = vset.pattern.permute.xlu0 %v1389_v4  ;;  %v1409_v24 = vmov 31   ;;  %v1410_v25 = vmov 19   ;;  %v1411_v26 = vmov 21   ;;  %v1412_v27 = vmov 22   ;;  %p1362_p4 = por %p1361_p3, %p1360_p2 }
  0x2c   :  { %163 = vperm.xlu1 %1265, %v1448_v2   ;;  %91 = vperm.xlu0 %1263, %v1448_v2   ;;  %v1413_v28 = vmov 24   ;;  %v1414_v29 = vmov 25   ;;  %v1415_v30 = vmov 27   ;;  %v1416_v31 = vmov 28  }
  0x2d   :  { %v1417_v32 = vmov 30   ;;  %v63_v34 = vshrl.u32 %v62_v33, 7  ;;  %v55_v35 = vld [vmem:[#allocation6] ss:$8 sm:$0x3]  ;;  %p1363_p5 = pnand %p1362_p4, %p1356_p1 }
  0x2e   :  { %v125_v38 = vld [vmem:[#allocation6 + $0x2] ss:$8 sm:$0x3]  ;;  %v74_v41 = vld [vmem:[#allocation8] ss:$8 sm:$0x3] }
  0x2f   :  { %v1482_v36 = vsub.s32 0, %v63_v34  ;;  %v1484_v37 = vsub.s32 1, %v63_v34  ;;  %v89_v42 = vld [vmem:[#allocation6 + $0x1] ss:$8 sm:$0x3] }
  0x30   :  { %1266 = vset.pattern.permute.xlu1 %v1390_v5  ;;  %1267 = vset.pattern.permute.xlu0 %v1391_v6  ;;  %v144_v43 = vld [vmem:[#allocation8 + $0x2] ss:$8 sm:$0x3]  ;;  %v161_v46 = vld [vmem:[#allocation6 + $0x3] ss:$8 sm:$0x3] }
  0x31   :  { %199 = vperm.xlu1 %1266, %v1448_v2   ;;  %235 = vperm.xlu0 %1267, %v1448_v2   ;;  %v65_v39 = vrot.slane %v55_v35, %v1482_v36  ;;  %v69_v40 = vrot.slane %v55_v35, %v1484_v37  ;;  %v134_v47 = vrot.slane %v125_v38, %v1482_v36  ;;  %v180_v51 = vld [vmem:[#allocation8 + $0x3] ss:$8 sm:$0x3]  ;;  %v108_v52 = vld [vmem:[#allocation8 + $0x1] ss:$8 sm:$0x3] }
  0x32   :  { %v138_v48 = vrot.slane %v125_v38, %v1484_v37  ;;  %v79_v49 = vrot.slane %v74_v41, %v1482_v36  ;;  %v83_v50 = vrot.slane %v74_v41, %v1484_v37  ;;  %v98_v55 = vrot.slane %v89_v42, %v1482_v36  ;;  %v197_v57 = vld [vmem:[#allocation6 + $0x4] ss:$8 sm:$0x3]  ;;  %v233_v3 = vld [vmem:[#allocation6 + $0x5] ss:$8 sm:$0x3] }
  0x33   :  { %v102_v56 = vrot.slane %v89_v42, %v1484_v37  ;;  %v149_v58 = vrot.slane %v144_v43, %v1482_v36  ;;  %v153_v59 = vrot.slane %v144_v43, %v1484_v37  ;;  %v170_v60 = vrot.slane %v161_v46, %v1482_v36 }
  0x34   :  { %v174_v61 = vrot.slane %v161_v46, %v1484_v37  ;;  %v185_v62 = vrot.slane %v180_v51, %v1482_v36  ;;  %v189_v63 = vrot.slane %v180_v51, %v1484_v37  ;;  %v113_v0 = vrot.slane %v108_v52, %v1482_v36 }
  0x35   :  { %1268 = vset.pattern.permute.xlu1 %v1392_v7  ;;  %1270 = vset.pattern.permute.xlu0 %v1393_v8  ;;  %v117_v1 = vrot.slane %v108_v52, %v1484_v37  ;;  %v206_v8 = vrot.slane %v197_v57, %v1482_v36 }
  0x36   :  { %271 = vperm.xlu1 %1268, %v1448_v2   ;;  %343 = vperm.xlu0 %1270, %v1448_v2  }
  0x3a   :  { %1269 = vset.pattern.permute.xlu1 %v1394_v9  ;;  %1273 = vset.pattern.permute.xlu0 %v1395_v10  ;;  %v210_v9 = vrot.slane %v197_v57, %v1484_v37 }
  0x3b   :  { %307 = vperm.xlu1 %1269, %v1448_v2   ;;  %451 = vperm.xlu0 %1273, %v1448_v2  }
  0x3f   :  { %1271 = vset.pattern.permute.xlu1 %v1396_v11  ;;  %1276 = vset.pattern.permute.xlu0 %v1397_v12 }
  0x40   :  { %379 = vperm.xlu1 %1271, %v1448_v2   ;;  %559 = vperm.xlu0 %1276, %v1448_v2  }
  0x44   :  { %1272 = vset.pattern.permute.xlu1 %v1398_v13  ;;  %1279 = vset.pattern.permute.xlu0 %v1399_v14  ;;  %v252_v14 = vld [vmem:[#allocation8 + $0x5] ss:$8 sm:$0x3] }
  0x45   :  { %415 = vperm.xlu1 %1272, %v1448_v2   ;;  %667 = vperm.xlu0 %1279, %v1448_v2  }
  0x49   :  { %1274 = vset.pattern.permute.xlu1 %v1400_v15  ;;  %1282 = vset.pattern.permute.xlu0 %v1401_v16  ;;  %v269_v15 = vld [vmem:[#allocation6 + $0x6] ss:$8 sm:$0x3] }
  0x4a   :  { %487 = vperm.xlu1 %1274, %v1448_v2   ;;  %775 = vperm.xlu0 %1282, %v1448_v2  }
  0x4e   :  { %1275 = vset.pattern.permute.xlu1 %v1402_v17  ;;  %1285 = vset.pattern.permute.xlu0 %v1403_v18  ;;  %v242_v18 = vrot.slane %v233_v3, %v1482_v36 }
  0x4f   :  { %523 = vperm.xlu1 %1275, %v1448_v2   ;;  %883 = vperm.xlu0 %1285, %v1448_v2  }
  0x53   :  { %1277 = vset.pattern.permute.xlu1 %v1404_v19  ;;  %1288 = vset.pattern.permute.xlu0 %v1405_v20  ;;  %v246_v19 = vrot.slane %v233_v3, %v1484_v37 }
  0x54   :  { %595 = vperm.xlu1 %1277, %v1448_v2   ;;  %991 = vperm.xlu0 %1288, %v1448_v2  }
  0x58   :  { %1278 = vset.pattern.permute.xlu1 %v1406_v21  ;;  %1291 = vset.pattern.permute.xlu0 %v1407_v22 }
  0x59   :  { %631 = vperm.xlu1 %1278, %v1448_v2   ;;  %1099 = vperm.xlu0 %1291, %v1448_v2  }
  0x5d   :  { %1280 = vset.pattern.permute.xlu1 %v1408_v23  ;;  %1294 = vset.pattern.permute.xlu0 %v1409_v24 }
  0x5e   :  { %703 = vperm.xlu1 %1280, %v1448_v2  }
  0x62   :  { %1281 = vset.pattern.permute.xlu1 %v1410_v25  ;;  %v261_v25 = vrot.slane %v252_v14, %v1484_v37 }
  0x63   :  { %739 = vperm.xlu1 %1281, %v1448_v2  }
  0x67   :  { %1283 = vset.pattern.permute.xlu1 %v1411_v26  ;;  %v278_v26 = vrot.slane %v269_v15, %v1482_v36 }
  0x68   :  { %811 = vperm.xlu1 %1283, %v1448_v2  }
  0x6c   :  { %1284 = vset.pattern.permute.xlu1 %v1412_v27  ;;  %v282_v27 = vrot.slane %v269_v15, %v1484_v37 }
  0x6d   :  { %847 = vperm.xlu1 %1284, %v1448_v2  }
  0x71   :  { %1286 = vset.pattern.permute.xlu1 %v1413_v28 }
  0x72   :  { %919 = vperm.xlu1 %1286, %v1448_v2  }
  0x76   :  { %1287 = vset.pattern.permute.xlu1 %v1414_v29 }
  0x77   :  { %955 = vperm.xlu1 %1287, %v1448_v2  }
  0x7b   :  { %1289 = vset.pattern.permute.xlu1 %v1415_v30 }
  0x7c   :  { %1027 = vperm.xlu1 %1289, %v1448_v2  }
  0x80   :  { %1290 = vset.pattern.permute.xlu1 %v1416_v31 }
  0x81   :  { %1063 = vperm.xlu1 %1290, %v1448_v2  }
  0x85   :  { %1292 = vset.pattern.permute.xlu1 %v1417_v32 }
  0x86   :  { %1135 = vperm.xlu1 %1292, %v1448_v2  }
  0x8a   :  { %1293 = vset.pattern.permute.xlu1 %v1409_v24  ;;  %v257_v24 = vrot.slane %v252_v14, %v1482_v36 }
  0x8b   :  { %1171 = vperm.xlu1 %1293, %v1448_v2   ;;  %v216_v2 = vld [vmem:[#allocation8 + $0x4] ss:$8 sm:$0x3] }
  0x8c   :  { %v221_v16 = vrot.slane %v216_v2, %v1482_v36  ;;  %v225_v17 = vrot.slane %v216_v2, %v1484_v37 }
  0xa2   :  { %v128_v44 = vpop.permute.xlu1 %127  ;;  %v59_v45 = vpop.permute.xlu0 %58 }
  0xa3   :  { %v72_v53 = vmul.f32 %v65_v39, %v59_v45  ;;  %v73_v54 = vmul.f32 %v69_v40, %v59_v45  ;;  %v141_v4 = vmul.f32 %v134_v47, %v128_v44  ;;  %v142_v5 = vmul.f32 %v138_v48, %v128_v44  ;;  %v288_v44 = vld [vmem:[#allocation8 + $0x6] ss:$8 sm:$0x3] }
  0xa5   :  { %v86_v10 = vadd.f32 %v79_v49, %v72_v53  ;;  %v87_v11 = vadd.f32 %v83_v50, %v73_v54  ;;  %v156_v28 = vadd.f32 %v149_v58, %v141_v4  ;;  %v157_v29 = vadd.f32 %v153_v59, %v142_v5  ;;  %v305_v49 = vld [vmem:[#allocation6 + $0x7] ss:$8 sm:$0x3]  ;;  %v341_v50 = vld [vmem:[#allocation6 + $0x10] ss:$8 sm:$0x3] }
  0xa6   :  { %v293_v53 = vrot.slane %v288_v44, %v1482_v36  ;;  %v297_v54 = vrot.slane %v288_v44, %v1484_v37 }
  0xa7   :  { %v164_v6 = vpop.permute.xlu1 %163  ;;  %v92_v7 = vpop.permute.xlu0 %91 }
  0xa8   :  { %v105_v12 = vmul.f32 %v98_v55, %v92_v7  ;;  %v106_v13 = vmul.f32 %v102_v56, %v92_v7  ;;  %v177_v20 = vmul.f32 %v170_v60, %v164_v6  ;;  %v178_v21 = vmul.f32 %v174_v61, %v164_v6  ;;  %v324_v56 = vld [vmem:[#allocation8 + $0x7] ss:$8 sm:$0x3] }
  0xa9   :  { %v314_v61 = vrot.slane %v305_v49, %v1482_v36  ;;  %v329_v2 = vrot.slane %v324_v56, %v1482_v36  ;;  %v333_v3 = vrot.slane %v324_v56, %v1484_v37 }
  0xaa   :  { %v120_v22 = vadd.f32 %v113_v0, %v105_v12  ;;  %v121_v23 = vadd.f32 %v117_v1, %v106_v13  ;;  %v192_v40 = vadd.f32 %v185_v62, %v177_v20  ;;  %v193_v41 = vadd.f32 %v189_v63, %v178_v21  ;;  %v360_v1 = vld [vmem:[#allocation8 + $0x10] ss:$8 sm:$0x3] }
  0xab   :  { %v318_v62 = vrot.slane %v305_v49, %v1484_v37  ;;  %v350_v63 = vrot.slane %v341_v50, %v1482_v36  ;;  %v354_v0 = vrot.slane %v341_v50, %v1484_v37  ;;  %v369_v12 = vrot.slane %v360_v1, %v1484_v37  ;;  %v485_v50 = vld [vmem:[#allocation6 + $0x14] ss:$8 sm:$0x3] }
  0xac   :  { %v122_v30 = vmin.f32 %v86_v10, %v120_v22  ;;  %v123_v31 = vmin.f32 %v87_v11, %v121_v23  ;;  %v200_v32 = vpop.permute.xlu1 %199  ;;  %v236_v33 = vpop.permute.xlu0 %235  ;;  %v365_v11 = vrot.slane %v360_v1, %v1482_v36 }
  0xad   :  { %v213_v34 = vmul.f32 %v206_v8, %v200_v32  ;;  %v214_v35 = vmul.f32 %v210_v9, %v200_v32  ;;  %v249_v38 = vmul.f32 %v242_v18, %v236_v33  ;;  %v250_v39 = vmul.f32 %v246_v19, %v236_v33  ;;  %v377_v9 = vld [vmem:[#allocation6 + $0x11] ss:$8 sm:$0x3]  ;;  %v432_v33 = vld [vmem:[#allocation8 + $0x12] ss:$8 sm:$0x3] }
  0xae   :  { %v158_v42 = vmin.f32 %v122_v30, %v156_v28  ;;  %v159_v43 = vmin.f32 %v123_v31, %v157_v29  ;;  %v386_v18 = vrot.slane %v377_v9, %v1482_v36  ;;  %v390_v19 = vrot.slane %v377_v9, %v1484_v37 }
  0xaf   :  { %v228_v45 = vadd.f32 %v221_v16, %v213_v34  ;;  %v229_v46 = vadd.f32 %v225_v17, %v214_v35  ;;  %v264_v51 = vadd.f32 %v257_v24, %v249_v38  ;;  %v265_v52 = vadd.f32 %v261_v25, %v250_v39  ;;  %v396_v17 = vld [vmem:[#allocation8 + $0x11] ss:$8 sm:$0x3] }
  0xb0   :  { %v194_v47 = vmin.f32 %v158_v42, %v192_v40  ;;  %v195_v48 = vmin.f32 %v159_v43, %v193_v41  ;;  %v401_v24 = vrot.slane %v396_v17, %v1482_v36  ;;  %v405_v25 = vrot.slane %v396_v17, %v1484_v37  ;;  %v468_v42 = vld [vmem:[#allocation8 + $0x13] ss:$8 sm:$0x3]  ;;  %v576_v17 = vld [vmem:[#allocation8 + $0x16] ss:$8 sm:$0x3] }
  0xb1   :  { %v272_v55 = vpop.permute.xlu1 %271  ;;  %v344_v4 = vpop.permute.xlu0 %343  ;;  %v437_v43 = vrot.slane %v432_v33, %v1482_v36  ;;  %v441_v44 = vrot.slane %v432_v33, %v1484_v37  ;;  %v612_v33 = vld [vmem:[#allocation8 + $0x17] ss:$8 sm:$0x3] }
  0xb2   :  { %v230_v57 = vmin.f32 %v194_v47, %v228_v45  ;;  %v231_v58 = vmin.f32 %v195_v48, %v229_v46  ;;  %v285_v59 = vmul.f32 %v278_v26, %v272_v55  ;;  %v286_v60 = vmul.f32 %v282_v27, %v272_v55  ;;  %v413_v26 = vld [vmem:[#allocation6 + $0x12] ss:$8 sm:$0x3]  ;;  %v449_v27 = vld [vmem:[#allocation6 + $0x13] ss:$8 sm:$0x3] }
  0xb3   :  { %v357_v15 = vmul.f32 %v350_v63, %v344_v4  ;;  %v358_v16 = vmul.f32 %v354_v0, %v344_v4  ;;  %v422_v38 = vrot.slane %v413_v26, %v1482_v36  ;;  %v426_v39 = vrot.slane %v413_v26, %v1484_v37  ;;  %v557_v4 = vld [vmem:[#allocation6 + $0x16] ss:$8 sm:$0x3] }
  0xb4   :  { %v266_v5 = vmin.f32 %v230_v57, %v264_v51  ;;  %v267_v6 = vmin.f32 %v231_v58, %v265_v52  ;;  %v300_v7 = vadd.f32 %v293_v53, %v285_v59  ;;  %v301_v8 = vadd.f32 %v297_v54, %v286_v60  ;;  %v504_v58 = vld [vmem:[#allocation8 + $0x14] ss:$8 sm:$0x3] }
  0xb5   :  { %v372_v30 = vadd.f32 %v365_v11, %v357_v15  ;;  %v373_v31 = vadd.f32 %v369_v12, %v358_v16  ;;  %v458_v40 = vrot.slane %v449_v27, %v1482_v36  ;;  %v462_v41 = vrot.slane %v449_v27, %v1484_v37 }
  0xb6   :  { %v308_v10 = vpop.permute.xlu1 %307  ;;  %v302_v20 = vmin.f32 %v266_v5, %v300_v7  ;;  %v303_v21 = vmin.f32 %v267_v6, %v301_v8  ;;  %v452_v45 = vpop.permute.xlu0 %451  ;;  %v473_v52 = vrot.slane %v468_v42, %v1482_v36  ;;  %v477_v53 = vrot.slane %v468_v42, %v1484_v37 }
  0xb7   :  { %v321_v13 = vmul.f32 %v314_v61, %v308_v10  ;;  %v322_v14 = vmul.f32 %v318_v62, %v308_v10  ;;  %v465_v56 = vmul.f32 %v458_v40, %v452_v45  ;;  %v466_v57 = vmul.f32 %v462_v41, %v452_v45  ;;  %v540_v10 = vld [vmem:[#allocation8 + $0x15] ss:$8 sm:$0x3]  ;;  %v665_v45 = vld [vmem:[#allocation6 + $0x21] ss:$8 sm:$0x3] }
  0xb8   :  { %v494_v59 = vrot.slane %v485_v50, %v1482_v36  ;;  %v498_v60 = vrot.slane %v485_v50, %v1484_v37  ;;  %v509_v1 = vrot.slane %v504_v58, %v1482_v36  ;;  %v566_v15 = vrot.slane %v557_v4, %v1482_v36 }
  0xb9   :  { %v336_v22 = vadd.f32 %v329_v2, %v321_v13  ;;  %v337_v23 = vadd.f32 %v333_v3, %v322_v14  ;;  %v513_v2 = vrot.slane %v504_v58, %v1484_v37  ;;  %v521_v3 = vld [vmem:[#allocation6 + $0x15] ss:$8 sm:$0x3]  ;;  %v480_v7 = vadd.f32 %v473_v52, %v465_v56  ;;  %v684_v58 = vld [vmem:[#allocation8 + $0x21] ss:$8 sm:$0x3] }
  0xba   :  { %v481_v8 = vadd.f32 %v477_v53, %v466_v57  ;;  %v530_v13 = vrot.slane %v521_v3, %v1482_v36  ;;  %v534_v14 = vrot.slane %v521_v3, %v1484_v37  ;;  %v570_v16 = vrot.slane %v557_v4, %v1484_v37 }
  0xbb   :  { %v338_v28 = vmin.f32 %v302_v20, %v336_v22  ;;  %v339_v29 = vmin.f32 %v303_v21, %v337_v23  ;;  %v380_v32 = vpop.permute.xlu1 %379  ;;  %v560_v20 = vpop.permute.xlu0 %559  ;;  %v581_v27 = vrot.slane %v576_v17, %v1482_v36  ;;  %v617_v42 = vrot.slane %v612_v33, %v1482_v36 }
  0xbc   :  { %v393_v34 = vmul.f32 %v386_v18, %v380_v32  ;;  %v394_v35 = vmul.f32 %v390_v19, %v380_v32  ;;  %v545_v18 = vrot.slane %v540_v10, %v1482_v36  ;;  %v549_v19 = vrot.slane %v540_v10, %v1484_v37  ;;  %v720_v10 = vld [vmem:[#allocation8 + $0x22] ss:$8 sm:$0x3] }
  0xbd   :  { %v374_v46 = vmin.f32 %v338_v28, %v372_v30  ;;  %v375_v47 = vmin.f32 %v339_v29, %v373_v31  ;;  %v585_v28 = vrot.slane %v576_v17, %v1484_v37  ;;  %v573_v31 = vmul.f32 %v566_v15, %v560_v20 }
  0xbe   :  { %v408_v48 = vadd.f32 %v401_v24, %v393_v34  ;;  %v409_v49 = vadd.f32 %v405_v25, %v394_v35  ;;  %v593_v25 = vld [vmem:[#allocation6 + $0x17] ss:$8 sm:$0x3]  ;;  %v574_v32 = vmul.f32 %v570_v16, %v560_v20  ;;  %v674_v56 = vrot.slane %v665_v45, %v1482_v36  ;;  %v773_v20 = vld [vmem:[#allocation6 + $0x24] ss:$8 sm:$0x3] }
  0xbf   :  { %v602_v34 = vrot.slane %v593_v25, %v1482_v36  ;;  %v606_v35 = vrot.slane %v593_v25, %v1484_v37  ;;  %v678_v57 = vrot.slane %v665_v45, %v1484_v37  ;;  %v689_v4 = vrot.slane %v684_v58, %v1482_v36 }
  0xc0   :  { %v416_v51 = vpop.permute.xlu1 %415  ;;  %v410_v61 = vmin.f32 %v374_v46, %v408_v48  ;;  %v411_v62 = vmin.f32 %v375_v47, %v409_v49  ;;  %v588_v48 = vadd.f32 %v581_v27, %v573_v31  ;;  %v589_v49 = vadd.f32 %v585_v28, %v574_v32 }
  0xc1   :  { %v429_v54 = vmul.f32 %v422_v38, %v416_v51  ;;  %v430_v55 = vmul.f32 %v426_v39, %v416_v51  ;;  %v648_v51 = vld [vmem:[#allocation8 + $0x20] ss:$8 sm:$0x3]  ;;  %v725_v17 = vrot.slane %v720_v10, %v1482_v36  ;;  %v782_v31 = vrot.slane %v773_v20, %v1482_v36 }
  0xc2   :  { %v786_v32 = vrot.slane %v773_v20, %v1484_v37 }
  0xc3   :  { %v444_v63 = vadd.f32 %v437_v43, %v429_v54  ;;  %v445_v0 = vadd.f32 %v441_v44, %v430_v55  ;;  %v621_v43 = vrot.slane %v612_v33, %v1484_v37  ;;  %v629_v44 = vld [vmem:[#allocation6 + $0x20] ss:$8 sm:$0x3]  ;;  %v792_v33 = vld [vmem:[#allocation8 + $0x24] ss:$8 sm:$0x3] }
  0xc4   :  { %v638_v54 = vrot.slane %v629_v44, %v1482_v36  ;;  %v642_v55 = vrot.slane %v629_v44, %v1484_v37  ;;  %v797_v45 = vrot.slane %v792_v33, %v1482_v36 }
  0xc5   :  { %v446_v5 = vmin.f32 %v410_v61, %v444_v63  ;;  %v447_v6 = vmin.f32 %v411_v62, %v445_v0  ;;  %v488_v9 = vpop.permute.xlu1 %487  ;;  %v668_v61 = vpop.permute.xlu0 %667 }
  0xc6   :  { %v501_v11 = vmul.f32 %v494_v59, %v488_v9  ;;  %v502_v12 = vmul.f32 %v498_v60, %v488_v9  ;;  %v653_v59 = vrot.slane %v648_v51, %v1482_v36  ;;  %v657_v60 = vrot.slane %v648_v51, %v1484_v37  ;;  %v828_v51 = vld [vmem:[#allocation8 + $0x25] ss:$8 sm:$0x3] }
  0xc7   :  { %v482_v21 = vmin.f32 %v446_v5, %v480_v7  ;;  %v483_v22 = vmin.f32 %v447_v6, %v481_v8  ;;  %v693_v5 = vrot.slane %v684_v58, %v1484_v37  ;;  %v681_v8 = vmul.f32 %v674_v56, %v668_v61 }
  0xc8   :  { %v516_v23 = vadd.f32 %v509_v1, %v501_v11  ;;  %v517_v24 = vadd.f32 %v513_v2, %v502_v12  ;;  %v701_v2 = vld [vmem:[#allocation6 + $0x22] ss:$8 sm:$0x3]  ;;  %v682_v9 = vmul.f32 %v678_v57, %v668_v61  ;;  %v833_v58 = vrot.slane %v828_v51, %v1482_v36  ;;  %v881_v61 = vld [vmem:[#allocation6 + $0x27] ss:$8 sm:$0x3] }
  0xc9   :  { %v710_v11 = vrot.slane %v701_v2, %v1482_v36  ;;  %v714_v12 = vrot.slane %v701_v2, %v1484_v37 }
  0xca   :  { %v524_v26 = vpop.permute.xlu1 %523  ;;  %v518_v38 = vmin.f32 %v482_v21, %v516_v23  ;;  %v519_v39 = vmin.f32 %v483_v22, %v517_v24  ;;  %v696_v23 = vadd.f32 %v689_v4, %v681_v8  ;;  %v697_v24 = vadd.f32 %v693_v5, %v682_v9 }
  0xcb   :  { %v537_v29 = vmul.f32 %v530_v13, %v524_v26  ;;  %v538_v30 = vmul.f32 %v534_v14, %v524_v26  ;;  %v756_v26 = vld [vmem:[#allocation8 + $0x23] ss:$8 sm:$0x3]  ;;  %v890_v8 = vrot.slane %v881_v61, %v1482_v36  ;;  %v894_v9 = vrot.slane %v881_v61, %v1484_v37 }
  0xcd   :  { %v552_v40 = vadd.f32 %v545_v18, %v537_v29  ;;  %v553_v41 = vadd.f32 %v549_v19, %v538_v30  ;;  %v729_v18 = vrot.slane %v720_v10, %v1484_v37  ;;  %v737_v19 = vld [vmem:[#allocation6 + $0x23] ss:$8 sm:$0x3]  ;;  %v900_v10 = vld [vmem:[#allocation8 + $0x27] ss:$8 sm:$0x3] }
  0xce   :  { %v746_v29 = vrot.slane %v737_v19, %v1482_v36  ;;  %v750_v30 = vrot.slane %v737_v19, %v1484_v37  ;;  %v905_v20 = vrot.slane %v900_v10, %v1482_v36 }
  0xcf   :  { %v554_v46 = vmin.f32 %v518_v38, %v552_v40  ;;  %v555_v47 = vmin.f32 %v519_v39, %v553_v41  ;;  %v596_v50 = vpop.permute.xlu1 %595  ;;  %v776_v38 = vpop.permute.xlu0 %775 }
  0xd0   :  { %v609_v52 = vmul.f32 %v602_v34, %v596_v50  ;;  %v610_v53 = vmul.f32 %v606_v35, %v596_v50  ;;  %v761_v34 = vrot.slane %v756_v26, %v1482_v36  ;;  %v765_v35 = vrot.slane %v756_v26, %v1484_v37  ;;  %v936_v26 = vld [vmem:[#allocation8 + $0x30] ss:$8 sm:$0x3] }
  0xd1   :  { %v590_v62 = vmin.f32 %v554_v46, %v588_v48  ;;  %v591_v63 = vmin.f32 %v555_v47, %v589_v49  ;;  %v801_v46 = vrot.slane %v792_v33, %v1484_v37  ;;  %v789_v49 = vmul.f32 %v782_v31, %v776_v38 }
  0xd2   :  { %v624_v0 = vadd.f32 %v617_v42, %v609_v52  ;;  %v625_v1 = vadd.f32 %v621_v43, %v610_v53  ;;  %v809_v43 = vld [vmem:[#allocation6 + $0x25] ss:$8 sm:$0x3]  ;;  %v790_v50 = vmul.f32 %v786_v32, %v776_v38  ;;  %v941_v33 = vrot.slane %v936_v26, %v1482_v36  ;;  %v989_v38 = vld [vmem:[#allocation6 + $0x32] ss:$8 sm:$0x3] }
  0xd3   :  { %v818_v52 = vrot.slane %v809_v43, %v1482_v36  ;;  %v822_v53 = vrot.slane %v809_v43, %v1484_v37 }
  0xd4   :  { %v632_v3 = vpop.permute.xlu1 %631  ;;  %v626_v13 = vmin.f32 %v590_v62, %v624_v0  ;;  %v627_v14 = vmin.f32 %v591_v63, %v625_v1  ;;  %v804_v0 = vadd.f32 %v797_v45, %v789_v49  ;;  %v805_v1 = vadd.f32 %v801_v46, %v790_v50 }
  0xd5   :  { %v645_v6 = vmul.f32 %v638_v54, %v632_v3  ;;  %v646_v7 = vmul.f32 %v642_v55, %v632_v3  ;;  %v864_v3 = vld [vmem:[#allocation8 + $0x26] ss:$8 sm:$0x3]  ;;  %v998_v49 = vrot.slane %v989_v38, %v1482_v36  ;;  %v1002_v50 = vrot.slane %v989_v38, %v1484_v37 }
  0xd7   :  { %v660_v15 = vadd.f32 %v653_v59, %v645_v6  ;;  %v661_v16 = vadd.f32 %v657_v60, %v646_v7  ;;  %v837_v59 = vrot.slane %v828_v51, %v1484_v37  ;;  %v845_v60 = vld [vmem:[#allocation6 + $0x26] ss:$8 sm:$0x3]  ;;  %v1008_v51 = vld [vmem:[#allocation8 + $0x32] ss:$8 sm:$0x3] }
  0xd8   :  { %v854_v6 = vrot.slane %v845_v60, %v1482_v36  ;;  %v858_v7 = vrot.slane %v845_v60, %v1484_v37  ;;  %v1013_v61 = vrot.slane %v1008_v51, %v1482_v36 }
  0xd9   :  { %v662_v21 = vmin.f32 %v626_v13, %v660_v15  ;;  %v663_v22 = vmin.f32 %v627_v14, %v661_v16  ;;  %v704_v25 = vpop.permute.xlu1 %703  ;;  %v884_v13 = vpop.permute.xlu0 %883 }
  0xda   :  { %v717_v27 = vmul.f32 %v710_v11, %v704_v25  ;;  %v718_v28 = vmul.f32 %v714_v12, %v704_v25  ;;  %v869_v11 = vrot.slane %v864_v3, %v1482_v36  ;;  %v873_v12 = vrot.slane %v864_v3, %v1484_v37  ;;  %v1044_v3 = vld [vmem:[#allocation8 + $0x33] ss:$8 sm:$0x3] }
  0xdb   :  { %v698_v39 = vmin.f32 %v662_v21, %v696_v23  ;;  %v699_v40 = vmin.f32 %v663_v22, %v697_v24  ;;  %v909_v21 = vrot.slane %v900_v10, %v1484_v37  ;;  %v897_v24 = vmul.f32 %v890_v8, %v884_v13 }
  0xdc   :  { %v732_v41 = vadd.f32 %v725_v17, %v717_v27  ;;  %v733_v42 = vadd.f32 %v729_v18, %v718_v28  ;;  %v917_v18 = vld [vmem:[#allocation6 + $0x30] ss:$8 sm:$0x3]  ;;  %v898_v25 = vmul.f32 %v894_v9, %v884_v13  ;;  %v1049_v10 = vrot.slane %v1044_v3, %v1482_v36  ;;  %v1097_v13 = vld [vmem:[#allocation6 + $0x35] ss:$8 sm:$0x3] }
  0xdd   :  { %v926_v27 = vrot.slane %v917_v18, %v1482_v36  ;;  %v930_v28 = vrot.slane %v917_v18, %v1484_v37 }
  0xde   :  { %v740_v44 = vpop.permute.xlu1 %739  ;;  %v734_v54 = vmin.f32 %v698_v39, %v732_v41  ;;  %v735_v55 = vmin.f32 %v699_v40, %v733_v42  ;;  %v912_v41 = vadd.f32 %v905_v20, %v897_v24  ;;  %v913_v42 = vadd.f32 %v909_v21, %v898_v25 }
  0xdf   :  { %v753_v47 = vmul.f32 %v746_v29, %v740_v44  ;;  %v754_v48 = vmul.f32 %v750_v30, %v740_v44  ;;  %v972_v44 = vld [vmem:[#allocation8 + $0x31] ss:$8 sm:$0x3]  ;;  %v1106_v24 = vrot.slane %v1097_v13, %v1482_v36  ;;  %v1110_v25 = vrot.slane %v1097_v13, %v1484_v37 }
  0xe1   :  { %v768_v56 = vadd.f32 %v761_v34, %v753_v47  ;;  %v769_v57 = vadd.f32 %v765_v35, %v754_v48  ;;  %v945_v34 = vrot.slane %v936_v26, %v1484_v37  ;;  %v953_v35 = vld [vmem:[#allocation6 + $0x31] ss:$8 sm:$0x3]  ;;  %v1116_v26 = vld [vmem:[#allocation8 + $0x35] ss:$8 sm:$0x3] }
  0xe2   :  { %v962_v47 = vrot.slane %v953_v35, %v1482_v36  ;;  %v966_v48 = vrot.slane %v953_v35, %v1484_v37  ;;  %v1121_v38 = vrot.slane %v1116_v26, %v1482_v36 }
  0xe3   :  { %v770_v62 = vmin.f32 %v734_v54, %v768_v56  ;;  %v771_v63 = vmin.f32 %v735_v55, %v769_v57  ;;  %v812_v2 = vpop.permute.xlu1 %811  ;;  %v992_v54 = vpop.permute.xlu0 %991 }
  0xe4   :  { %v825_v4 = vmul.f32 %v818_v52, %v812_v2  ;;  %v826_v5 = vmul.f32 %v822_v53, %v812_v2  ;;  %v977_v52 = vrot.slane %v972_v44, %v1482_v36  ;;  %v981_v53 = vrot.slane %v972_v44, %v1484_v37  ;;  %v1152_v44 = vld [vmem:[#allocation8 + $0x36] ss:$8 sm:$0x3] }
  0xe5   :  { %v806_v14 = vmin.f32 %v770_v62, %v804_v0  ;;  %v807_v15 = vmin.f32 %v771_v63, %v805_v1  ;;  %v1017_v62 = vrot.slane %v1008_v51, %v1484_v37  ;;  %v1005_v1 = vmul.f32 %v998_v49, %v992_v54 }
  0xe6   :  { %v840_v16 = vadd.f32 %v833_v58, %v825_v4  ;;  %v841_v17 = vadd.f32 %v837_v59, %v826_v5  ;;  %v1025_v59 = vld [vmem:[#allocation6 + $0x33] ss:$8 sm:$0x3]  ;;  %v1006_v2 = vmul.f32 %v1002_v50, %v992_v54  ;;  %v1157_v51 = vrot.slane %v1152_v44, %v1482_v36 }
  0xe7   :  { %v1034_v4 = vrot.slane %v1025_v59, %v1482_v36  ;;  %v1038_v5 = vrot.slane %v1025_v59, %v1484_v37  ;;  %v1188_v59 = vld [vmem:[#allocation8 + $0x37] ss:$8 sm:$0x3] }
  0xe8   :  { %v848_v19 = vpop.permute.xlu1 %847  ;;  %v842_v29 = vmin.f32 %v806_v14, %v840_v16  ;;  %v843_v30 = vmin.f32 %v807_v15, %v841_v17  ;;  %v1020_v16 = vadd.f32 %v1013_v61, %v1005_v1  ;;  %v1021_v17 = vadd.f32 %v1017_v62, %v1006_v2 }
  0xe9   :  { %v861_v22 = vmul.f32 %v854_v6, %v848_v19  ;;  %v862_v23 = vmul.f32 %v858_v7, %v848_v19  ;;  %v1080_v19 = vld [vmem:[#allocation8 + $0x34] ss:$8 sm:$0x3]  ;;  %v1197_v1 = vrot.slane %v1188_v59, %v1484_v37 }
  0xeb   :  { %v876_v31 = vadd.f32 %v869_v11, %v861_v22  ;;  %v877_v32 = vadd.f32 %v873_v12, %v862_v23  ;;  %v1053_v11 = vrot.slane %v1044_v3, %v1484_v37  ;;  %v1061_v12 = vld [vmem:[#allocation6 + $0x34] ss:$8 sm:$0x3] }
  0xec   :  { %v1070_v22 = vrot.slane %v1061_v12, %v1482_v36  ;;  %v1074_v23 = vrot.slane %v1061_v12, %v1484_v37 }
  0xed   :  { %v878_v39 = vmin.f32 %v842_v29, %v876_v31  ;;  %v879_v40 = vmin.f32 %v843_v30, %v877_v32  ;;  %v920_v43 = vpop.permute.xlu1 %919  ;;  %v1100_v29 = vpop.permute.xlu0 %1099 }
  0xee   :  { %v933_v45 = vmul.f32 %v926_v27, %v920_v43  ;;  %v934_v46 = vmul.f32 %v930_v28, %v920_v43  ;;  %v1085_v27 = vrot.slane %v1080_v19, %v1482_v36  ;;  %v1089_v28 = vrot.slane %v1080_v19, %v1484_v37 }
  0xef   :  { %v914_v55 = vmin.f32 %v878_v39, %v912_v41  ;;  %v915_v56 = vmin.f32 %v879_v40, %v913_v42  ;;  %v1125_v39 = vrot.slane %v1116_v26, %v1484_v37  ;;  %v1113_v42 = vmul.f32 %v1106_v24, %v1100_v29 }
  0xf0   :  { %v948_v57 = vadd.f32 %v941_v33, %v933_v45  ;;  %v949_v58 = vadd.f32 %v945_v34, %v934_v46  ;;  %v1133_v34 = vld [vmem:[#allocation6 + $0x36] ss:$8 sm:$0x3]  ;;  %v1114_v43 = vmul.f32 %v1110_v25, %v1100_v29 }
  0xf1   :  { %v1142_v45 = vrot.slane %v1133_v34, %v1482_v36  ;;  %v1146_v46 = vrot.slane %v1133_v34, %v1484_v37 }
  0xf2   :  { %v956_v60 = vpop.permute.xlu1 %955  ;;  %v950_v6 = vmin.f32 %v914_v55, %v948_v57  ;;  %v951_v7 = vmin.f32 %v915_v56, %v949_v58  ;;  %v1128_v56 = vadd.f32 %v1121_v38, %v1113_v42  ;;  %v1129_v57 = vadd.f32 %v1125_v39, %v1114_v43 }
  0xf3   :  { %v969_v63 = vmul.f32 %v962_v47, %v956_v60  ;;  %v970_v0 = vmul.f32 %v966_v48, %v956_v60 }
  0xf5   :  { %v984_v8 = vadd.f32 %v977_v52, %v969_v63  ;;  %v985_v9 = vadd.f32 %v981_v53, %v970_v0  ;;  %v1161_v52 = vrot.slane %v1152_v44, %v1484_v37  ;;  %v1169_v53 = vld [vmem:[#allocation6 + $0x37] ss:$8 sm:$0x3]  ;;  %v1193_v0 = vrot.slane %v1188_v59, %v1482_v36 }
  0xf6   :  { %v1178_v62 = vrot.slane %v1169_v53, %v1482_v36  ;;  %v1182_v63 = vrot.slane %v1169_v53, %v1484_v37 }
  0xf7   :  { %v986_v14 = vmin.f32 %v950_v6, %v984_v8  ;;  %v987_v15 = vmin.f32 %v951_v7, %v985_v9  ;;  %v1028_v18 = vpop.permute.xlu1 %1027 }
  0xf8   :  { %v1041_v20 = vmul.f32 %v1034_v4, %v1028_v18  ;;  %v1042_v21 = vmul.f32 %v1038_v5, %v1028_v18 }
  0xf9   :  { %v1022_v30 = vmin.f32 %v986_v14, %v1020_v16  ;;  %v1023_v31 = vmin.f32 %v987_v15, %v1021_v17 }
  0xfa   :  { %v1056_v32 = vadd.f32 %v1049_v10, %v1041_v20  ;;  %v1057_v33 = vadd.f32 %v1053_v11, %v1042_v21 }
  0xfc   :  { %v1064_v35 = vpop.permute.xlu1 %1063  ;;  %v1058_v47 = vmin.f32 %v1022_v30, %v1056_v32  ;;  %v1059_v48 = vmin.f32 %v1023_v31, %v1057_v33 }
  0xfd   :  { %v1077_v40 = vmul.f32 %v1070_v22, %v1064_v35  ;;  %v1078_v41 = vmul.f32 %v1074_v23, %v1064_v35 }
  0xff   :  { %v1092_v49 = vadd.f32 %v1085_v27, %v1077_v40  ;;  %v1093_v50 = vadd.f32 %v1089_v28, %v1078_v41 }
 0x101   :  { %v1094_v54 = vmin.f32 %v1058_v47, %v1092_v49  ;;  %v1095_v55 = vmin.f32 %v1059_v48, %v1093_v50  ;;  %v1136_v58 = vpop.permute.xlu1 %1135 }
 0x102   :  { %v1149_v60 = vmul.f32 %v1142_v45, %v1136_v58  ;;  %v1150_v61 = vmul.f32 %v1146_v46, %v1136_v58 }
 0x103   :  { %v1130_v2 = vmin.f32 %v1094_v54, %v1128_v56  ;;  %v1131_v3 = vmin.f32 %v1095_v55, %v1129_v57 }
 0x104   :  { %v1164_v4 = vadd.f32 %v1157_v51, %v1149_v60  ;;  %v1165_v5 = vadd.f32 %v1161_v52, %v1150_v61 }
 0x106   :  { %v1172_v6 = vpop.permute.xlu1 %1171  ;;  %v1166_v9 = vmin.f32 %v1130_v2, %v1164_v4  ;;  %v1167_v10 = vmin.f32 %v1131_v3, %v1165_v5 }
 0x107   :  { %v1185_v7 = vmul.f32 %v1178_v62, %v1172_v6  ;;  %v1186_v8 = vmul.f32 %v1182_v63, %v1172_v6 }
 0x109   :  { %v1200_v11 = vadd.f32 %v1193_v0, %v1185_v7  ;;  %v1201_v12 = vadd.f32 %v1197_v1, %v1186_v8 }
 0x10b   :  { %v1202_v13 = vmin.f32 %v1166_v9, %v1200_v11  ;;  %v1203_v14 = vmin.f32 %v1167_v10, %v1201_v12 }
 0x10d   :  { %v1204_v15 = vmax.f32 %v1202_v13, 0.0  ;;  %v1205_v16 = vmax.f32 %v1203_v14, 0.0 }
 0x10f   :  { %1206 = vst [vmem:[#allocation9] sm:$0xff] %v1204_v15  ;;  %1207 = vst [vmem:[#allocation9 + $0x8] sm:$0xff] %v1205_v16 }
 0x110   :  { %1366 = shalt.err (!%p1363_p5)
}
 0x111   :  { %1217 = dma.vmem_to_hbm [thread:$0]  %s1215_s2, 256, %s1620_s3, [#allocation5]  }
 0x112   :  { %1379 = dma.done.wait [#allocation5], 256  }
 0x113   :  { %1380 = vsyncadd [#allocation5], 4294967040 }
 0x114   :  { %1221 = vsyncpa [#allocation4], 1 }
 0x115   :  { %1222 = vsyncpa [#allocation7], 1 }
 0x116   :  { %1223 = vsyncpa [#allocation5], 1 }

</bundles_post_ra>
